<compile_context>
chip_gen: v7x
topology: tpu7x:2x2x1
jax: 0.10.0
libtpu: 0.0.40
codegen_flags: <defaults>
</compile_context>

<pallas_src>
import math

import jax
import jax.numpy as jnp
from jax.experimental import pallas as pl
from jax.experimental.pallas import tpu as pltpu


LANE = 128


def _mpnn_kernel(tile_first_ref, tile_count_ref,            # scalar prefetch (SMEM)
                 msg_ref, dst_ref, w_ref, b_ref, af_ref,    # streamed / resident inputs
                 out_ref,                                    # [tile_n, df_p] output tile
                 acc_ref):                                   # [tile_n, dmsg_p] f32 scratch
    i = pl.program_id(0)            # node tile (parallel)
    k = pl.program_id(1)            # edge-tile step within this node tile (reduction)
    tile_n = out_ref.shape[0]
    node_lo = i * tile_n

    @pl.when(k == 0)
    def _init():
        acc_ref[...] = jnp.zeros_like(acc_ref)

    # Only the first tile_count_ref[i] steps carry fresh edge tiles for this node
    # tile; later steps re-map (clamped) to the last tile and must not recompute.
    @pl.when(k < tile_count_ref[i])
    def _accumulate():
        # In-register scatter matrix: scatter[r, e] = 1 iff dst[e] == node_lo + r.
        local_dst = dst_ref[...] - node_lo                                # [1, tile_e]
        rows = jax.lax.broadcasted_iota(jnp.int32, (tile_n, 1), 0)        # [tile_n, 1]
        scatter = (local_dst == rows).astype(msg_ref.dtype)               # [tile_n, tile_e] 0/1
        acc_ref[...] += jnp.dot(scatter, msg_ref[...],
                                preferred_element_type=jnp.float32)

    @pl.when(k == pl.num_programs(1) - 1)
    def _finalize():
        # node_update: W_o(agg_message) + af, then LeakyReLU(0.1).  bf16 MXU
        # operands, f32 accumulation / epilogue.
        z = jnp.dot(acc_ref[...].astype(jnp.bfloat16), w_ref[...],
                    preferred_element_type=jnp.float32)
        z = z + b_ref[...] + af_ref[...]
        out_ref[...] = jnp.maximum(z, jnp.float32(0.1) * z)               # LeakyReLU(0.1)


def _round_up(x, m):
    return ((x + m - 1) // m) * m


def _pad2d(x, rows, cols):
    r, c = x.shape
    return jnp.pad(x, ((0, rows - r), (0, cols - c)))


def _nbytes(shape, dtype):
    return math.prod(shape) * jnp.dtype(dtype).itemsize


def mpnn_layer(nm, em, af, src, dst, W, b, *, tile_n=256, tile_e=512):
    """Fused MPNN layer: gathered sender features + segment-sum + decoder + residual + LeakyReLU.

    Note: on v5e (128x128-native MXUs) tile_n=128 / tile_e=256 are equally good;
    the 256/512 defaults target the 256x256 MXUs of v6e / v7x.
    """
    N, Dnm = nm.shape
    E, Dem = em.shape
    _, Df = af.shape
    Dmsg = Dnm + Dem

    n_pad = _round_up(N, tile_n)
    e_pad = _round_up(E, tile_e)
    dmsg_p = _round_up(Dmsg, LANE)
    df_p = _round_up(Df, LANE)
    num_n_tiles = n_pad // tile_n
    num_e_tiles = e_pad // tile_e

    # --- O(E) graph preprocessing in plain JAX --------------------------------
    # TODO(synk): when the graph is static across layers / steps, hoist this block
    # (argsort, gather, tile-range table) out of the per-call path and reuse it.
    order = jnp.argsort(dst)
    dst_s = dst[order].astype(jnp.int32)

    # Per-edge message = concat(nm[src], em), sorted by dst, padded, bf16.
    msg = jnp.concatenate([nm[src[order]], em[order]], axis=1)            # [E, Dmsg] f32
    msg_p = _pad2d(msg, e_pad, dmsg_p).astype(jnp.bfloat16)

    # dst padded with an out-of-range sentinel (never matches a real node row).
    dst_p = jnp.concatenate(
        [dst_s, jnp.full((e_pad - E,), n_pad, jnp.int32)]).astype(jnp.int32)
    dst_2d = dst_p.reshape(1, e_pad)

    # Per-node-tile range of overlapping edge tiles (edges are sorted by dst, so
    # the range is contiguous).  Drives the data-dependent index_map.
    edge_tile_id = (jnp.arange(e_pad, dtype=jnp.int32) // tile_e).astype(jnp.int32)
    node_tile_id = jnp.minimum(dst_p // tile_n, num_n_tiles)   # sentinel -> extra bucket
    first = (jnp.full((num_n_tiles + 1,), num_e_tiles, jnp.int32)
             .at[node_tile_id].min(edge_tile_id))[:num_n_tiles]
    last = (jnp.full((num_n_tiles + 1,), -1, jnp.int32)
            .at[node_tile_id].max(edge_tile_id))[:num_n_tiles]
    has_edges = last >= 0
    tile_first = jnp.where(has_edges, first, 0).astype(jnp.int32)
    tile_count = jnp.where(has_edges, last - first + 1, 1).astype(jnp.int32)

    # Static grid bound along the reduction axis (concretized; this wrapper runs
    # eagerly -- for a jitted static-graph setting pass/precompute this value).
    kmax = max(1, int(jax.device_get(jnp.max(tile_count))))

    # Decoder: W_o is Linear(Dmsg -> Df); concat layout matches msg's column order,
    # so a single [dmsg_p, df_p] weight matrix suffices.  bf16 for the MXU.
    w_p = _pad2d(W.T, dmsg_p, df_p).astype(jnp.bfloat16)
    b_p = _pad2d(b.reshape(1, Df), 1, df_p).astype(jnp.float32)
    af_p = _pad2d(af, n_pad, df_p).astype(jnp.float32)

    def _edge_tile(i, k, first_ref, count_ref):
        # Clamp into this node tile's overlapping range: out-of-range k steps map
        # to the same (last) tile -> Pallas issues no re-DMA for them.
        return first_ref[i] + jnp.minimum(k, count_ref[i] - 1)

    # --- VMEM budget from actual block sizes (double-buffered inputs/outputs) ---
    block_bytes = (
        2 * _nbytes((tile_e, dmsg_p), jnp.bfloat16)       # msg
        + 2 * _nbytes((8, tile_e), jnp.int32)              # dst (sublane-padded)
        + 2 * _nbytes((dmsg_p, df_p), jnp.bfloat16)        # W
        + 2 * _nbytes((8, df_p), jnp.float32)              # bias
        + 2 * _nbytes((tile_n, df_p), jnp.float32)         # af
        + 2 * _nbytes((tile_n, df_p), jnp.float32)         # out
        + _nbytes((tile_n, dmsg_p), jnp.float32))          # accumulator
    vmem_limit = int(min(max(4 * block_bytes, 16 << 20), 60 << 20))

    # --- advisory cost estimate (edge stream read ~once + boundary re-reads) ----
    flops = (2.0 * num_n_tiles * kmax * tile_n * tile_e * dmsg_p   # scatter @ msg
             + 2.0 * n_pad * dmsg_p * df_p)                        # decoder
    bytes_accessed = ((e_pad + num_n_tiles * tile_e) * (dmsg_p * 2 + 4)
                      + dmsg_p * df_p * 2 + df_p * 4
                      + n_pad * df_p * 4 * 2)
    cost = pl.CostEstimate(flops=int(flops), transcendentals=0,
                           bytes_accessed=int(bytes_accessed))

    grid_spec = pltpu.PrefetchScalarGridSpec(
        num_scalar_prefetch=2,
        grid=(num_n_tiles, kmax),
        in_specs=[
            pl.BlockSpec((tile_e, dmsg_p), lambda i, k, f, c: (_edge_tile(i, k, f, c), 0)),
            pl.BlockSpec((1, tile_e),      lambda i, k, f, c: (0, _edge_tile(i, k, f, c))),
            pl.BlockSpec((dmsg_p, df_p),   lambda i, k, f, c: (0, 0)),   # W (resident)
            pl.BlockSpec((1, df_p),        lambda i, k, f, c: (0, 0)),   # bias
            pl.BlockSpec((tile_n, df_p),   lambda i, k, f, c: (i, 0)),   # af tile
        ],
        out_specs=pl.BlockSpec((tile_n, df_p), lambda i, k, f, c: (i, 0)),
        scratch_shapes=[pltpu.VMEM((tile_n, dmsg_p), jnp.float32)],
    )

    out = pl.pallas_call(
        _mpnn_kernel,
        out_shape=jax.ShapeDtypeStruct((n_pad, df_p), jnp.float32),
        grid_spec=grid_spec,
        compiler_params=pltpu.CompilerParams(
            dimension_semantics=("parallel", "arbitrary"),
            vmem_limit_bytes=vmem_limit,
        ),
        cost_estimate=cost,
    )(tile_first, tile_count, msg_p, dst_2d, w_p, b_p, af_p)

    return out[:N, :Df]


def reference(nm, em, af, src, dst, W, b):
    """Pure-JAX f32 reference matching the PyTorch/DGL forward."""
    edge_message = jnp.concatenate([nm[src], em], axis=1)          # [E, Dnm+Dem]
    agg = jnp.zeros((af.shape[0], edge_message.shape[1]),
                    edge_message.dtype).at[dst].add(edge_message)  # segment-sum over dst
    z = agg @ W.T + b + af                                         # Linear W_o + residual
    return jnp.where(z >= 0, z, 0.1 * z)                           # LeakyReLU(0.1)


if __name__ == "__main__":
    # Small deterministic problem (2 node tiles x ~2 edge tiles per node tile).
    N, E = 512, 2048          # nodes, edges (4 incoming edges per node)
    Dnm, Dem, Df = 32, 16, 32

    key = jax.random.PRNGKey(0)
    k_nm, k_em, k_af, k_w, k_b = jax.random.split(key, 5)

    nm = jax.random.normal(k_nm, (N, Dnm), dtype=jnp.float32)
    em = jax.random.normal(k_em, (E, Dem), dtype=jnp.float32)
    af = jax.random.normal(k_af, (N, Df), dtype=jnp.float32)

    # Deterministic graph connectivity.
    e_ids = jnp.arange(E)
    src = ((e_ids * 3 + 1) % N).astype(jnp.int32)
    dst = ((e_ids * 5 + 2) % N).astype(jnp.int32)

    # node_decoder W_o = Linear(Dnm + Dem -> Df), deterministic init.
    W = 0.1 * jax.random.normal(k_w, (Df, Dnm + Dem), dtype=jnp.float32)
    b = 0.1 * jax.random.normal(k_b, (Df,), dtype=jnp.float32)

    out = mpnn_layer(nm, em, af, src, dst, W, b)
    out = jax.block_until_ready(out)

    ref = reference(nm, em, af, src, dst, W, b)
    assert out.shape == (N, Df)
    # bf16 MXU operands (messages, decoder weights) -> loosened tolerance vs the
    # f32 reference, as acknowledged in the performance review.
    assert jnp.allclose(out, ref, rtol=2e-2, atol=1e-1), "mismatch vs reference"

    # TODO(synk): nn.Dropout(p=0.1) is instantiated in __init__ but never applied
    # in forward, so it is intentionally not implemented.
    print("KERNEL_OK")
</pallas_src>

<mosaic_0001>
module attributes {stable_mosaic.version = 11 : i64} {
  func.func @_mpnn_kernel(%arg0: i32, %arg1: i32, %arg2: memref<2xi32, #tpu.memory_space<smem>>, %arg3: memref<2xi32, #tpu.memory_space<smem>>, %arg4: memref<512x128xbf16, #tpu.memory_space<vmem>>, %arg5: memref<1x512xi32, #tpu.memory_space<vmem>>, %arg6: memref<128x128xbf16, #tpu.memory_space<vmem>>, %arg7: memref<1x128xf32, #tpu.memory_space<vmem>>, %arg8: memref<256x128xf32, #tpu.memory_space<vmem>>, %arg9: memref<256x128xf32, #tpu.memory_space<vmem>>, %arg10: memref<256x128xf32, #tpu.memory_space<vmem>>) attributes {dimension_semantics = [#tpu.dimension_semantics<parallel>, #tpu.dimension_semantics<arbitrary>], iteration_bounds = array<i64: 2, 2>, scalar_prefetch = 2 : i64, scratch_operands = 1 : i64, tpu.core_type = #tpu.core_type<tc>, window_params = [{transform_indices = @transform_0, window_bounds = array<i64: 512, 128>}, {transform_indices = @transform_1, window_bounds = array<i64: 1, 512>}, {pipeline_mode = #tpu.pipeline_mode<synchronous>, transform_indices = @transform_2, window_bounds = array<i64: 128, 128>}, {pipeline_mode = #tpu.pipeline_mode<synchronous>, transform_indices = @transform_3, window_bounds = array<i64: 1, 128>}, {transform_indices = @transform_4, window_bounds = array<i64: 256, 128>}, {transform_indices = @transform_5, window_bounds = array<i64: 256, 128>}]} {
    %c256_i32 = arith.constant 256 : i32
    %0 = arith.muli %arg0, %c256_i32 : i32
    %c0_i32 = arith.constant 0 : i32
    %1 = arith.cmpi eq, %arg1, %c0_i32 : i32
    %2 = arith.extui %1 : i1 to i32
    %c0_i32_0 = arith.constant 0 : i32
    %3 = arith.cmpi ne, %2, %c0_i32_0 : i32
    scf.if %3 {
      %cst = arith.constant 0.000000e+00 : f32
      %12 = vector.broadcast %cst : f32 to vector<256x128xf32>
      %c0 = arith.constant 0 : index
      %c0_3 = arith.constant 0 : index
      %13 = vector.load %arg10[%c0, %c0_3] : memref<256x128xf32, #tpu.memory_space<vmem>>, vector<256x128xf32>
      tpu.vector_store %arg10[%c0, %c0_3], %12 {strides = array<i32>} : memref<256x128xf32, #tpu.memory_space<vmem>>, vector<256x128xf32>,
    } else {
    }
    %4 = arith.index_cast %arg0 : i32 to index
    %5 = memref.load %arg3[%4] : memref<2xi32, #tpu.memory_space<smem>>
    %6 = arith.cmpi slt, %arg1, %5 : i32
    %7 = arith.extui %6 : i1 to i32
    %c0_i32_1 = arith.constant 0 : i32
    %8 = arith.cmpi ne, %7, %c0_i32_1 : i32
    scf.if %8 {
      %c0 = arith.constant 0 : index
      %c0_3 = arith.constant 0 : index
      %12 = vector.load %arg5[%c0, %c0_3] : memref<1x512xi32, #tpu.memory_space<vmem>>, vector<1x512xi32>
      %13 = vector.broadcast %0 : i32 to vector<1x512xi32>
      %14 = arith.subi %12, %13 : vector<1x512xi32>
      %15 = tpu.iota {dimensions = array<i32: 0>} : vector<256x1xi32>
      %16 = vector.broadcast %14 : vector<1x512xi32> to vector<256x512xi32>
      %17 = vector.broadcast %15 : vector<256x1xi32> to vector<256x512xi32>
      %18 = arith.cmpi eq, %16, %17 : vector<256x512xi32>
      %19 = arith.extui %18 : vector<256x512xi1> to vector<256x512xi32>
      %20 = arith.sitofp %19 : vector<256x512xi32> to vector<256x512xf32>
      %21 = arith.truncf %20 : vector<256x512xf32> to vector<256x512xbf16>
      %c0_4 = arith.constant 0 : index
      %c0_5 = arith.constant 0 : index
      %22 = vector.load %arg10[%c0_4, %c0_5] : memref<256x128xf32, #tpu.memory_space<vmem>>, vector<256x128xf32>
      %c0_6 = arith.constant 0 : index
      %c0_7 = arith.constant 0 : index
      %23 = vector.load %arg4[%c0_6, %c0_7] : memref<512x128xbf16, #tpu.memory_space<vmem>>, vector<512x128xbf16>
      %cst = arith.constant dense<0.000000e+00> : vector<256x128xf32>
      %24 = tpu.matmul %21, %23, %cst {dimension_numbers = #tpu.dot_dimension_numbers<[1], [0], [0], [1], [0, 0, 1, 1], [], []>} : vector<256x512xbf16>, vector<512x128xbf16>, vector<256x128xf32> -> vector<256x128xf32>
      %25 = arith.addf %22, %24 : vector<256x128xf32>
      %c0_8 = arith.constant 0 : index
      %c0_9 = arith.constant 0 : index
      %26 = vector.load %arg10[%c0_8, %c0_9] : memref<256x128xf32, #tpu.memory_space<vmem>>, vector<256x128xf32>
      tpu.vector_store %arg10[%c0_8, %c0_9], %25 {strides = array<i32>} : memref<256x128xf32, #tpu.memory_space<vmem>>, vector<256x128xf32>,
    } else {
    }
    %c1_i32 = arith.constant 1 : i32
    %9 = arith.cmpi eq, %arg1, %c1_i32 : i32
    %10 = arith.extui %9 : i1 to i32
    %c0_i32_2 = arith.constant 0 : i32
    %11 = arith.cmpi ne, %10, %c0_i32_2 : i32
    scf.if %11 {
      %c0 = arith.constant 0 : index
      %c0_3 = arith.constant 0 : index
      %12 = vector.load %arg10[%c0, %c0_3] : memref<256x128xf32, #tpu.memory_space<vmem>>, vector<256x128xf32>
      %13 = arith.truncf %12 : vector<256x128xf32> to vector<256x128xbf16>
      %c0_4 = arith.constant 0 : index
      %c0_5 = arith.constant 0 : index
      %14 = vector.load %arg6[%c0_4, %c0_5] : memref<128x128xbf16, #tpu.memory_space<vmem>>, vector<128x128xbf16>
      %cst = arith.constant dense<0.000000e+00> : vector<256x128xf32>
      %15 = tpu.matmul %13, %14, %cst {dimension_numbers = #tpu.dot_dimension_numbers<[1], [0], [0], [1], [0, 0, 1, 1], [], []>} : vector<256x128xbf16>, vector<128x128xbf16>, vector<256x128xf32> -> vector<256x128xf32>
      %c0_6 = arith.constant 0 : index
      %c0_7 = arith.constant 0 : index
      %16 = vector.load %arg7[%c0_6, %c0_7] : memref<1x128xf32, #tpu.memory_space<vmem>>, vector<1x128xf32>
      %17 = vector.broadcast %16 : vector<1x128xf32> to vector<256x128xf32>
      %18 = arith.addf %15, %17 : vector<256x128xf32>
      %c0_8 = arith.constant 0 : index
      %c0_9 = arith.constant 0 : index
      %19 = vector.load %arg8[%c0_8, %c0_9] : memref<256x128xf32, #tpu.memory_space<vmem>>, vector<256x128xf32>
      %20 = arith.addf %18, %19 : vector<256x128xf32>
      %cst_10 = arith.constant 1.000000e-01 : f32
      %21 = vector.broadcast %cst_10 : f32 to vector<256x128xf32>
      %22 = arith.mulf %21, %20 : vector<256x128xf32>
      %23 = arith.maximumf %20, %22 : vector<256x128xf32>
      %c0_11 = arith.constant 0 : index
      %c0_12 = arith.constant 0 : index
      %24 = vector.load %arg9[%c0_11, %c0_12] : memref<256x128xf32, #tpu.memory_space<vmem>>, vector<256x128xf32>
      tpu.vector_store %arg9[%c0_11, %c0_12], %23 {strides = array<i32>} : memref<256x128xf32, #tpu.memory_space<vmem>>, vector<256x128xf32>,
    } else {
    }
    return
  }
  func.func @transform_0(%arg0: i32, %arg1: i32, %arg2: memref<2xi32, #tpu.memory_space<smem>>, %arg3: memref<2xi32, #tpu.memory_space<smem>>) -> (i32, i32) {
    %0 = arith.index_cast %arg0 : i32 to index
    %1 = memref.load %arg2[%0] : memref<2xi32, #tpu.memory_space<smem>>
    %2 = arith.index_cast %arg0 : i32 to index
    %3 = memref.load %arg3[%2] : memref<2xi32, #tpu.memory_space<smem>>
    %c1_i32 = arith.constant 1 : i32
    %4 = arith.subi %3, %c1_i32 : i32
    %5 = arith.minsi %arg1, %4 : i32
    %6 = arith.addi %1, %5 : i32
    %c0_i32 = arith.constant 0 : i32
    %c0_i32_0 = arith.constant 0 : i32
    return %6, %c0_i32 : i32, i32
  }
  func.func @transform_1(%arg0: i32, %arg1: i32, %arg2: memref<2xi32, #tpu.memory_space<smem>>, %arg3: memref<2xi32, #tpu.memory_space<smem>>) -> (i32, i32) {
    %0 = arith.index_cast %arg0 : i32 to index
    %1 = memref.load %arg2[%0] : memref<2xi32, #tpu.memory_space<smem>>
    %2 = arith.index_cast %arg0 : i32 to index
    %3 = memref.load %arg3[%2] : memref<2xi32, #tpu.memory_space<smem>>
    %c1_i32 = arith.constant 1 : i32
    %4 = arith.subi %3, %c1_i32 : i32
    %5 = arith.minsi %arg1, %4 : i32
    %6 = arith.addi %1, %5 : i32
    %c0_i32 = arith.constant 0 : i32
    %c0_i32_0 = arith.constant 0 : i32
    return %c0_i32, %6 : i32, i32
  }
  func.func @transform_2(%arg0: i32, %arg1: i32, %arg2: memref<2xi32, #tpu.memory_space<smem>>, %arg3: memref<2xi32, #tpu.memory_space<smem>>) -> (i32, i32) {
    %c0_i32 = arith.constant 0 : i32
    %c0_i32_0 = arith.constant 0 : i32
    %c0_i32_1 = arith.constant 0 : i32
    return %c0_i32, %c0_i32_0 : i32, i32
  }
  func.func @transform_3(%arg0: i32, %arg1: i32, %arg2: memref<2xi32, #tpu.memory_space<smem>>, %arg3: memref<2xi32, #tpu.memory_space<smem>>) -> (i32, i32) {
    %c0_i32 = arith.constant 0 : i32
    %c0_i32_0 = arith.constant 0 : i32
    %c0_i32_1 = arith.constant 0 : i32
    return %c0_i32, %c0_i32_0 : i32, i32
  }
  func.func @transform_4(%arg0: i32, %arg1: i32, %arg2: memref<2xi32, #tpu.memory_space<smem>>, %arg3: memref<2xi32, #tpu.memory_space<smem>>) -> (i32, i32) {
    %c0_i32 = arith.constant 0 : i32
    %c0_i32_0 = arith.constant 0 : i32
    return %arg0, %c0_i32 : i32, i32
  }
  func.func @transform_5(%arg0: i32, %arg1: i32, %arg2: memref<2xi32, #tpu.memory_space<smem>>, %arg3: memref<2xi32, #tpu.memory_space<smem>>) -> (i32, i32) {
    %c0_i32 = arith.constant 0 : i32
    %c0_i32_0 = arith.constant 0 : i32
    return %arg0, %c0_i32 : i32, i32
  }
}

</mosaic_0001>

<bundles_post_ra>
// kernel: tpu_custom_call.1
= control target key start
LH: loop header
LB: loop body
LE: loop exit
PB: predicated region body
PF: predicated region fallthrough
CT: control target
= control target key end

     0   :  { %s5087_s0 = inlined_call_operand.hbm [shape: s32[2], index: 0, kind: input, shape index: {}]   ;;  %s5088_s2 = inlined_call_operand.hbm [shape: bf16[2048,128], index: 2, kind: input, shape index: {}]   ;;  %s5089_s3 = inlined_call_operand.hbm [shape: s32[1,2048], index: 3, kind: input, shape index: {}]   ;;  %s5090_s4 = inlined_call_operand.hbm [shape: bf16[128,128], index: 4, kind: input, shape index: {}]   ;;  %s5091_s5 = inlined_call_operand.vmem [shape: f32[1,128], index: 5, kind: input, shape index: {}]   ;;  %s5092_s6 = inlined_call_operand.hbm [shape: f32[512,128], index: 6, kind: input, shape index: {}]   ;;  %s5093_s7 = inlined_call_operand.hbm [shape: f32[512,128], index: 7, kind: output, shape index: {}]   ;;  %s5094_s1 = inlined_call_operand.vmem [shape: s32[2], index: 1, kind: input, shape index: {}]  }
   0x1   :  { %5123 = sst [smem:[#allocation39_spill]] %s5088_s2  ;;  %s3086_s26 = scalar_lea.hbm %s5087_s0, 16 }
   0x2   :  { %5124 = sst [smem:[#allocation40_spill]] %s5089_s3  ;;  %p3087_p0 = scmp.ne.s32.totalorder %s5087_s0, %s3086_s26 }
   0x3   :  { %5125 = sst [smem:[#allocation41_spill]] %s5090_s4  ;;  %p3090_p1 = scmp.lt.u32.totalorder %s3086_s26, %s5087_s0 }
   0x4   :  { %5126 = sst [smem:[#allocation42_spill]] %s5091_s5 }
   0x5   :  { %5127 = sst [smem:[#allocation43_spill]] %s5092_s6  ;;  %p3092_p2 = pnand %p3090_p1, %p3087_p0 }
   0x6   :  { %5128 = sst [smem:[#allocation44_spill]] %s5093_s7 }
   0x7   :  { %3095 = shalt.err (!%p3092_p2)  }
   0x8   :  { %s3388_s8 = smov [#allocation4]   ;;  %s14_s13 = sshll.u32 %s5094_s1, 4  ;;  %s15_s13 = int_to_ptr.vmem [resolvable:$true] %s14_s13 }
   0x9   :  { %13 = dma.hbm_to_smem %s5087_s0, 16, %s3388_s8, [#allocation3] }
   0xa   :  { %s3096_s14 = scalar_lea.vmem %s15_s13, 16  ;;  %p3101_p4 = scmp.lt.s32.totalorder %s15_s13, %s15_s13 }
   0xb   :  { %p3097_p3 = scmp.ne.s32.totalorder %s15_s13, %s3096_s14  ;;  %p3102_p5 = scmp.lt.s32.totalorder %s3096_s14, %s3096_s14 }
   0xd   :  { %p3103_p6 = por %p3102_p5, %p3101_p4 }
   0xf   :  { %p3104_p7 = pnand %p3103_p6, %p3097_p3 }
  0x11   :  { %3107 = shalt.err (!%p3104_p7)  }
  0x12   :  { %s3389_s15 = smov [#allocation5]  }
  0x13   :  { %17 = dma.vmem_to_smem %s15_s13, 16, %s3389_s15, [#allocation3] }
  0x14   :  { %3310 = dma.done.wait [#allocation3], 32 }
  0x15   :  { %3311 = vsyncadd [#allocation3], 4294967264 }
  0x16   :  { %19 = sfence }
  0x17   :  { %20 = vsyncpa [#allocation7], 0 }
  0x18   :  { %22 = vsyncpa [#allocation7 + $0x1], 0 }
  0x19   :  { %23 = vsyncpa [#allocation10], 0 }
  0x1a   :  { %25 = vsyncpa [#allocation10 + $0x1], 0 }
  0x1b   :  { %26 = vsyncpa [#allocation13], 0 }
  0x1c   :  { %28 = vsyncpa [#allocation13 + $0x1], 0 }
  0x1d   :  { %29 = vsyncpa [#allocation8], 0 }
  0x1e   :  { %31 = vsyncpa [#allocation8 + $0x1], 0  ;;  %s3458_s0 = smov 0   ;;  %s3460_s1 = smov 0  }
  0x1f   :  { %s3462_s16 = smov 0   ;;  %s3464_s17 = smov 0  }
  0x20   :  { %s3466_s18 = smov 0   ;;  %s3468_s19 = smov 0  }
  0x21   :  { %s3470_s20 = smov 0   ;;  %s3472_s21 = smov 0  }
  0x22   :  { %s3474_s22 = smov 0   ;;  %s3476_s23 = smov 0  }
  0x23   :  { %s3478_s24 = smov 0   ;;  %s3480_s25 = smov 0  }
  0x24   :  { %s3482_s26 = smov 0   ;;  %s3484_s27 = smov 0  }
  0x25 LB: > { %5129 = sst [smem:[#allocation29_spill]] %s3350_s18  ;;  %s3529_s28 = sadd.s32 4294967295, %s3386_s27   ;;  %s3386_s27 = sphi %s3484_s27, %s37_s27   ;;  %s3382_s26 = sphi %s3482_s26, %s5429_s26   ;;  %s3378_s25 = sphi %s3480_s25, %s5428_s25   ;;  %s3374_s24 = sphi %s3478_s24, %s5427_s24   ;;  %s3370_s23 = sphi %s3476_s23, %s5426_s23   ;;  %s3366_s22 = sphi %s3474_s22, %s5420_s22   ;;  %s3362_s21 = sphi %s3472_s21, %s5419_s21   ;;  %s3358_s20 = sphi %s3470_s20, %s5418_s20   ;;  %s3354_s19 = sphi %s3468_s19, %s5425_s19   ;;  %s3350_s18 = sphi %s3466_s18, %s5424_s18   ;;  %s3346_s17 = sphi %s3464_s17, %s5417_s17   ;;  %s3342_s16 = sphi %s3462_s16, %s5423_s16   ;;  %s3338_s1 = sphi %s3460_s1, %s5422_s1   ;;  %s3334_s0 = sphi %s3458_s0, %s5421_s0  }
  0x26   : > { %5130 = sst [smem:[#allocation30_spill]] %s3362_s21  ;;  %p2231_p8 = scmp.ge.s32.totalorder %s3386_s27, 1 }
  0x27   : > { %5131 = sst [smem:[#allocation31_spill]] %s3366_s22  ;;  %p5096_p9 = scmp.eq.s32.totalorder %s3529_s28, 0 }
  0x28   : > { %5132 = sst [smem:[#allocation32_spill]] %s3370_s23  ;;  %p224_p11 = scmp.lt.s32.totalorder %s3386_s27, 5 }
  0x29   : > { %5133 = sst [smem:[#allocation33_spill]] %s3374_s24  ;;  %s3390_s30 = smov [#allocation11]  }
  0x2a   : > { %5134 = sst [smem:[#allocation34_spill]] %s3529_s28  ;;  %p3535_p12 = pnand %p2231_p8, %p224_p11 }
  0x2b   : > { %s236_s8 = sshll.u32 %s3390_s30, 4  ;;  %s5138_s4 = sld [smem:[#allocation41_spill]]  ;;  %s237_s8 = int_to_ptr.vmem [resolvable:$true] %s236_s8 }
  0x2c   : > { %s5135_s29 = scalar_select %p3535_p12, 1, 0 }
  0x2d   : > { %p2893_p13 = pneg %p3535_p12 }
  0x2e   : > { %5136 = sst [smem:[#allocation35_spill]] %s5135_s29 }
  0x2f   : > { %p3544_p1 = pnand %p2893_p13, %p5096_p9 }
  0x31   : > { %s3108_s12 = scalar_lea.hbm %s5138_s4, 1024  ;;  %p3110_p3 = pneg %p3544_p1 }
  0x32   : > { %p3109_p2 = scmp.ne.s32.totalorder %s5138_s4, %s3108_s12  ;;  %p3115_p6 = scmp.lt.u32.totalorder %s3108_s12, %s5138_s4 }
  0x34   : > { %p3111_p4 = pnand %p3110_p3, %p3109_p2 }
  0x36   : > { %p3112_p5 = pneg %p3111_p4 }
  0x38   : > { %p3117_p7 = pnand %p3115_p6, %p3112_p5 }
  0x3a   : > { %3120 = shalt.err (!%p3117_p7)
}
  0x3b   : > { %s3121_s7 = scalar_lea.vmem %s237_s8, 1024  ;;  %p3129_p10 = scmp.lt.s32.totalorder %s237_s8, %s237_s8 }
  0x3c   : > { %p3122_p8 = scmp.ne.s32.totalorder %s237_s8, %s3121_s7  ;;  %p3130_p0 = scmp.lt.s32.totalorder %s3121_s7, %s3121_s7 }
  0x3e   : > { %p3124_p11 = pnand %p3122_p8, %p3110_p3  ;;  %p3131_p9 = por %p3130_p0, %p3129_p10 }
  0x40   : > { %p3125_p13 = pneg %p3124_p11 }
  0x42   : > { %p3132_p12 = pnand %p3131_p9, %p3125_p13 }
  0x44   : > { %3135 = shalt.err (!%p3132_p12)
}
  0x45   : > { %s5098_s10 = smov 64   ;;  %s5099_s11 = smov 4  }
  0x46   : > { %2896 = dma.hbm_to_vmem [thread:$0]  (!%p3544_p1), %s5138_s4, 1024, %s237_s8, [#allocation10], %s5098_s10, %s5098_s10, %s5099_s11  }
  0x47   : > { %s46_s13 = sadd.s32 1, %s3378_s25  ;;  %s49_s14 = sadd.s32 1, %s3382_s26 }
  0x48   : > { %p47_p9 = scmp.ge.s32.totalorder %s46_s13, 2  ;;  %s3570_s15 = sld [smem:[#allocation4 + %s3382_s26]] }
  0x49   : > { %s54_s30 = sld [smem:[#allocation5 + %s3382_s26]]  ;;  %p75_p10 = scmp.ne.s32.totalorder %s3366_s22, %s3362_s21 }
  0x4a   : > { %s5431_s13 = smov (%p47_p9, %s46_s13), 0  ;;  %s5433_s14 = smov (!%p47_p9, %s49_s14), %s3382_s26 }
  0x4b   : > { %p51_p12 = scmp.ge.s32.totalorder %s5433_s14, 2  ;;  %p5113_p0 = scmp.eq.s32.totalorder %s3386_s27, 0 }
  0x4c   : > { %p81_p1 = scmp.ne.s32.totalorder %s3362_s21, %s3358_s20  ;;  %s5102_s8 = sand.u32 1, %s3366_s22  }
  0x4d   : > { %s5435_s14 = smov (%p51_p12, %s5433_s14), 0  ;;  %p3587_p2 = por %p5113_p0, %p75_p10 }
  0x4e   : > { %s59_s10 = sld [smem:[#allocation4 + %s5435_s14]]  ;;  %p5140_p4 = scmp.eq.s32.totalorder %s3529_s28, 0 }
  0x4f   : > { %s2227_s7 = sadd.s32 4294967295, %s54_s30  ;;  %s60_s20 = sld [smem:[#allocation5 + %s5435_s14]] }
  0x50   : > { %p56_p3 = scmp.lt.s32.totalorder %s3378_s25, %s2227_s7  ;;  %p3596_p5 = por %p5140_p4, %p81_p1 }
  0x51   : > { %s2234_s9 = sshll.u32 %s5102_s8, 8  ;;  %p5143_p7 = scmp.lt.s32.totalorder %s3386_s27, 4 }
  0x52   : > { %s5141_s11 = scalar_select %p3596_p5, 1, 0 }
  0x53   : > { %s57_s30 = scalar_select %p56_p3, %s3378_s25, %s2227_s7 }
  0x54   : > { %5142 = sst [smem:[#allocation36_spill]] %s5141_s11  ;;  %s257_s21 = scalar_lea.vmem [#allocation6], %s2234_s9 }
  0x55   : > { %s58_s4 = sadd.s32 %s57_s30, %s3570_s15  ;;  %s2228_s24 = sadd.s32 4294967295, %s60_s20 }
  0x56   : > { %s2875_s5 = scalar_select %p3587_p2, [#allocation4], [#allocation15] }
  0x57   : > { %s2876_s23 = scalar_select %p3587_p2, %s3382_s26, 0 }
  0x58   : > { %s270_s29 = sshll.u32 %s257_s21, 4  ;;  %p62_p6 = scmp.lt.s32.totalorder %s5431_s13, %s2228_s24  ;;  %s3610_s29 = int_to_ptr.vmem [resolvable:$true] %s270_s29 }
  0x59   : > { %s5437_s5 = smov (!%p5143_p7, %s2875_s5), [#allocation19]  ;;  %p5144_p8 = pmov %p5143_p7 }
  0x5a   : > { %s63_s15 = scalar_select %p62_p6, %s5431_s13, %s2228_s24 }
  0x5b   : > { %s5439_s23 = smov (!%p5144_p8, %s2876_s23), 0  ;;  %p5145_p11 = pmov %p5143_p7 }
  0x5c   : > { %s64_s7 = sadd.s32 %s63_s15, %s59_s10  ;;  %s258_s20 = sld [smem:[%s5437_s5 + %s5439_s23]] }
  0x5d   : > { %p3621_p13 = pnand %p5145_p11, %p3587_p2  ;;  %s65_s9 = ssub.s32 %s58_s4, %s64_s7 }
  0x5e   : > { %p66_p9 = scmp.eq.s32.totalorder %s65_s9, 0  ;;  %s5147_s30 = sadd.s32 1, %s3366_s22 }
  0x5f   : > { %s2877_s24 = scalar_select %p3587_p2, [#allocation5], [#allocation16] }
  0x60   : > { %s3630_s8 = scalar_select %p66_p9, %s3366_s22, %s5147_s30  }
  0x61   : > { %p5149_p10 = pmov %p5143_p7  ;;  %s3635_s15 = sld [smem:[#allocation4 + %s3382_s26]] }
  0x62   : > { %5148 = sst [smem:[#allocation37_spill]] %s3630_s8  ;;  %p113_p12 = scmp.ne.s32.totalorder %s3354_s19, %s3350_s18 }
  0x63   : > { %s5441_s24 = smov (!%p5149_p10, %s2877_s24), [#allocation20]  ;;  %s3638_s11 = sld [smem:[#allocation5 + %s3382_s26]] }
  0x64   : > { %s259_s10 = sld [smem:[%s5441_s24 + %s5439_s23]]  ;;  %p119_p1 = scmp.ne.s32.totalorder %s3350_s18, %s3346_s17 }
  0x65   : > { %s3641_s4 = sld [smem:[#allocation4 + %s5435_s14]]  ;;  %p3655_p3 = por %p113_p12, %p5113_p0 }
  0x66   : > { %s3644_s5 = sld [smem:[#allocation5 + %s5435_s14]]  ;;  %p3661_p6 = por %p119_p1, %p5140_p4 }
  0x67   : > { %s5150_s9 = scalar_select %p3655_p3, 1, 0 }
  0x68   : > { %s5151_s24 = scalar_select %p3661_p6, 1, 0 }
  0x69   : > { %s5111_s12 = sadd.s32 4294967295, %s3638_s11  ;;  %s5155_s2 = sld [smem:[#allocation39_spill]] }
  0x6a   : > { %s2235_s23 = sadd.s32 4294967295, %s259_s10  ;;  %5152 = sst [smem:[#allocation38_spill]] %s5151_s24 }
  0x6b   : > { %p261_p2 = scmp.lt.s32.totalorder %s3378_s25, %s2235_s23  ;;  %p3671_p7 = scmp.lt.s32.totalorder %s3378_s25, %s5111_s12 }
  0x6c   : > { %s5112_s8 = sadd.s32 4294967295, %s3644_s5  ;;  %p3138_p9 = pneg %p3621_p13 }
  0x6d   : > { %s262_s30 = scalar_select %p261_p2, %s3378_s25, %s2235_s23 }
  0x6e   : > { %p3678_p8 = scmp.lt.s32.totalorder %s5431_s13, %s5112_s8  ;;  %s5156_s23 = sand.u32 1, %s3366_s22  }
  0x6f   : > { %s263_s6 = sadd.s32 %s262_s30, %s258_s20  ;;  %s282_s20 = sand.u32 1, %s3354_s19  }
  0x70   : > { %s2557_s10 = sshll.u32 %s263_s6, 12  ;;  %s3690_s30 = scalar_lea.sflag [#allocation7], %s5156_s23 }
  0x71   : > { %s5154_s7 = scalar_select %p3678_p8, 1, 0 }
  0x72   : > { %s3685_s28 = scalar_lea.hbm %s5155_s2, %s2557_s10  ;;  %s3141_s18 = scalar_lea.hbm %s5155_s2, 16384 }
  0x73   : > { %s3136_s12 = scalar_lea.hbm %s3685_s28, 4096  ;;  %p3142_p1 = scmp.lt.u32.totalorder %s3685_s28, %s5155_s2 }
  0x74   : > { %p3137_p11 = scmp.ne.s32.totalorder %s3685_s28, %s3136_s12  ;;  %p3143_p2 = scmp.lt.u32.totalorder %s3141_s18, %s3136_s12 }
  0x75   : > { %p3145_p0 = scmp.lt.u32.totalorder %s3136_s12, %s3685_s28 }
  0x76   : > { %p3139_p10 = pnand %p3138_p9, %p3137_p11  ;;  %p3144_p4 = por %p3143_p2, %p3142_p1 }
  0x78   : > { %p3140_p12 = pneg %p3139_p10  ;;  %p3146_p6 = por %p3145_p0, %p3144_p4 }
  0x7a   : > { %p3147_p5 = pnand %p3146_p6, %p3140_p12 }
  0x7c   : > { %3150 = shalt.err (!%p3147_p5)
}
  0x7d   : > { %s3151_s23 = scalar_lea.vmem %s3610_s29, 4096  ;;  %s3393_s6 = smov [#allocation6]  }
  0x7e   : > { %p3152_p11 = scmp.ne.s32.totalorder %s3610_s29, %s3151_s23  ;;  %s3156_s3 = sshll.u32 %s3393_s6, 4  ;;  %s3157_s3 = int_to_ptr.vmem [resolvable:$false] %s3156_s3 }
  0x7f   : > { %s3158_s8 = scalar_lea.vmem %s3157_s3, 8192  ;;  %p3159_p8 = scmp.lt.s32.totalorder %s3610_s29, %s3157_s3 }
  0x80   : > { %p3154_p10 = pnand %p3152_p11, %p3138_p9  ;;  %p3160_p1 = scmp.lt.s32.totalorder %s3158_s8, %s3151_s23 }
  0x82   : > { %p3155_p3 = pneg %p3154_p10  ;;  %p3161_p2 = por %p3160_p1, %p3159_p8 }
  0x84   : > { %p3162_p0 = pnand %p3161_p2, %p3155_p3 }
  0x86   : > { %3165 = shalt.err (!%p3162_p0)
}
  0x87   : > { %s5157_s12 = smov 4   ;;  %s5158_s18 = smov 64  }
  0x88   : > { %2904 = dma.hbm_to_vmem [thread:$0]  (!%p3621_p13), %s3685_s28, 4096, %s3610_s29, %s3690_s30, %s5158_s18, %s5158_s18, %s5157_s12  }
  0x89   : > { %s5159_s21 = sadd.s32 4294967295, %s3638_s11  ;;  %s5160_s23 = sadd.s32 4294967295, %s3644_s5 }
  0x8a   : > { %s95_s10 = scalar_select %p3671_p7, %s3378_s25, %s5159_s21 }
  0x8b   : > { %p5161_p5 = scmp.ne.s32.totalorder %s5154_s7, 0  ;;  %s2238_s8 = sshll.u32 %s282_s20, 2 }
  0x8c   : > { %s96_s3 = sadd.s32 %s95_s10, %s3635_s15  ;;  %s284_s24 = scalar_lea.vmem [#allocation9], %s2238_s8 }
  0x8d   : > { %s101_s6 = scalar_select %p5161_p5, %s5431_s13, %s5160_s23 }
  0x8e   : > { %s298_s28 = sshll.u32 %s284_s24, 4  ;;  %p5162_p3 = scmp.ne.s32.totalorder %s5150_s9, 0  ;;  %s3735_s28 = int_to_ptr.vmem [resolvable:$true] %s298_s28 }
  0x8f   : > { %s102_s2 = sadd.s32 %s101_s6, %s3641_s4  ;;  %s5163_s11 = sadd.s32 1, %s3354_s19 }
  0x90   : > { %s103_s22 = ssub.s32 %s96_s3, %s102_s2  ;;  %p5164_p6 = scmp.lt.s32.totalorder %s3386_s27, 4 }
  0x91   : > { %p104_p13 = scmp.eq.s32.totalorder %s103_s22, 0  ;;  %s5167_s5 = sld [smem:[#allocation34_spill]] }
  0x92   : > { %s2880_s29 = scalar_select %p5162_p3, [#allocation4], [#allocation17] }
  0x93   : > { %s3742_s15 = scalar_select %p104_p13, %s3354_s19, %s5163_s11  }
  0x94   : > { %s2881_s4 = scalar_select %p5162_p3, %s3382_s26, 0 }
  0x95   : > { %s5443_s29 = smov (!%p5164_p6, %s2880_s29), [#allocation21]  ;;  %p5165_p7 = pmov %p5164_p6 }
  0x96   : > { %s2882_s2 = scalar_select %p5162_p3, [#allocation5], [#allocation18] }
  0x97   : > { %s5445_s4 = smov (!%p5165_p7, %s2881_s4), 0  ;;  %p5166_p8 = pmov %p5164_p6 }
  0x98   : > { %s285_s22 = sld [smem:[%s5443_s29 + %s5445_s4]]  ;;  %p5169_p12 = pmov %p5164_p6 }
  0x99   : > { %p3757_p9 = pnand %p5166_p8, %p5162_p3  ;;  %s2226_s17 = sadd.s32 4294967294, %s3386_s27  }
  0x9a   : > { %s5447_s2 = smov (!%p5169_p12, %s2882_s2), [#allocation22]  ;;  %s171_s20 = ssub.s32 %s3382_s26, %s5435_s14 }
  0x9b   : > { %s286_s24 = sld [smem:[%s5447_s2 + %s5445_s4]]  ;;  %p172_p4 = scmp.eq.s32.totalorder %s171_s20, 0 }
  0x9c   : > { %s174_s30 = sadd.s32 1, %s3342_s16  ;;  %p181_p11 = scmp.ne.s32.totalorder %s3342_s16, %s3338_s1 }
  0x9d   : > { %p187_p10 = scmp.ne.s32.totalorder %s3338_s1, %s3334_s0  ;;  %p217_p1 = scmp.eq.s32.totalorder %s2226_s17, 3 }
  0x9e   : > { %p5170_p0 = scmp.eq.s32.totalorder %s3386_s27, 0  ;;  %p5172_p13 = scmp.eq.s32.totalorder %s5167_s5, 0 }
  0x9f   : > { %s3779_s18 = scalar_select %p172_p4, %s3342_s16, %s174_s30  }
  0xa0   : > { %p3774_p5 = por %p181_p11, %p5170_p0  ;;  %p3784_p3 = por %p187_p10, %p5172_p13 }
  0xa1   : > { %s2239_s12 = sadd.s32 4294967295, %s286_s24  ;;  %p5174_p6 = scmp.eq.s32.totalorder %s5167_s5, 3 }
  0xa2   : > { %p288_p2 = scmp.lt.s32.totalorder %s3378_s25, %s2239_s12  ;;  %p3794_p8 = por %p217_p1, %p187_p10 }
  0xa3   : > { %s5173_s10 = scalar_select %p3784_p3, 1, 0 }
  0xa4   : > { %s289_s21 = scalar_select %p288_p2, %s3378_s25, %s2239_s12 }
  0xa5   : > { %p3790_p7 = por %p5174_p6, %p181_p11  ;;  %s305_s29 = sand.u32 1, %s3342_s16  }
  0xa6   : > { %s290_s6 = sadd.s32 %s289_s21, %s285_s22  ;;  %s5177_s2 = sld [smem:[#allocation40_spill]] }
  0xa7   : > { %s5175_s23 = scalar_select %p3790_p7, 1, 0 }
  0xa8   : > { %s5176_s3 = scalar_select %p3794_p8, 1, 0 }
  0xa9   : > { %s2558_s8 = sshll.u32 %s290_s6, 6  ;;  %s5178_s17 = sand.u32 1, %s3386_s27  }
  0xaa   : > { %s281_s5 = scalar_lea.sflag [#allocation10], %s5178_s17  ;;  %p3168_p4 = pneg %p3757_p9 }
  0xac   : > { %s3802_s24 = scalar_lea.hbm %s5177_s2, %s2558_s8  ;;  %s3171_s12 = scalar_lea.hbm %s5177_s2, 256 }
  0xad   : > { %s3166_s20 = scalar_lea.hbm %s3802_s24, 64  ;;  %p3172_p1 = scmp.lt.u32.totalorder %s3802_s24, %s5177_s2 }
  0xae   : > { %p3167_p12 = scmp.ne.s32.totalorder %s3802_s24, %s3166_s20  ;;  %p3173_p2 = scmp.lt.u32.totalorder %s3171_s12, %s3166_s20 }
  0xaf   : > { %p3175_p13 = scmp.lt.u32.totalorder %s3166_s20, %s3802_s24 }
  0xb0   : > { %p3169_p11 = pnand %p3168_p4, %p3167_p12  ;;  %p3174_p0 = por %p3173_p2, %p3172_p1 }
  0xb2   : > { %p3170_p10 = pneg %p3169_p11  ;;  %p3176_p6 = por %p3175_p13, %p3174_p0 }
  0xb4   : > { %p3177_p8 = pnand %p3176_p6, %p3170_p10 }
  0xb6   : > { %3180 = shalt.err (!%p3177_p8)
}
  0xb7   : > { %s3181_s8 = scalar_lea.vmem %s3735_s28, 64  ;;  %s3394_s11 = smov [#allocation9]  }
  0xb8   : > { %p3182_p12 = scmp.ne.s32.totalorder %s3735_s28, %s3181_s8  ;;  %s3186_s4 = sshll.u32 %s3394_s11, 4  ;;  %s3187_s4 = int_to_ptr.vmem [resolvable:$false] %s3186_s4 }
  0xb9   : > { %s3188_s17 = scalar_lea.vmem %s3187_s4, 128  ;;  %p3189_p3 = scmp.lt.s32.totalorder %s3735_s28, %s3187_s4 }
  0xba   : > { %p3184_p11 = pnand %p3182_p12, %p3168_p4  ;;  %p3190_p1 = scmp.lt.s32.totalorder %s3188_s17, %s3181_s8 }
  0xbc   : > { %p3185_p7 = pneg %p3184_p11  ;;  %p3191_p2 = por %p3190_p1, %p3189_p3 }
  0xbe   : > { %p3192_p0 = pnand %p3191_p2, %p3185_p7 }
  0xc0   : > { %3195 = shalt.err (!%p3192_p0)
}
  0xc1   : > { %2911 = dma.hbm_to_vmem [thread:$0]  (!%p3757_p9), %s3802_s24, 64, %s3735_s28, %s281_s5  }
  0xc2   : > { %s2242_s20 = sshll.u32 %s305_s29, 8  ;;  %s2559_s22 = sshll.u32 %s3382_s26, 12 }
  0xc3   : > { %s5179_s21 = sld [smem:[#allocation43_spill]]  ;;  %s309_s7 = scalar_lea.vmem [#allocation12], %s2242_s20 }
  0xc4   : > { %s316_s11 = sshll.u32 %s309_s7, 4  ;;  %p5181_p3 = scmp.lt.s32.totalorder %s3386_s27, 4  ;;  %s3847_s11 = int_to_ptr.vmem [resolvable:$true] %s316_s11 }
  0xc5   : > { %s3851_s28 = scalar_lea.sflag [#allocation13], %s305_s29 }
  0xc6   : > { %p3843_p7 = pnand %p5181_p3, %p3774_p5 }
  0xc8   : > { %p3198_p8 = pneg %p3843_p7 }
  0xc9   : > { %s5180_s6 = smov %s5179_s21  ;;  %s3837_s8 = scalar_lea.hbm %s5179_s21, %s2559_s22 }
  0xca   : > { %s3196_s24 = scalar_lea.hbm %s3837_s8, 4096  ;;  %s3201_s17 = scalar_lea.hbm %s5180_s6, 8192 }
  0xcb   : > { %p3197_p9 = scmp.ne.s32.totalorder %s3837_s8, %s3196_s24  ;;  %p3202_p5 = scmp.lt.u32.totalorder %s3837_s8, %s5180_s6 }
  0xcc   : > { %p3203_p13 = scmp.lt.u32.totalorder %s3201_s17, %s3196_s24  ;;  %p3205_p12 = scmp.lt.u32.totalorder %s3196_s24, %s3837_s8 }
  0xcd   : > { %p3199_p4 = pnand %p3198_p8, %p3197_p9 }
  0xce   : > { %p3204_p6 = por %p3203_p13, %p3202_p5 }
  0xcf   : > { %p3200_p10 = pneg %p3199_p4 }
  0xd0   : > { %p3206_p11 = por %p3205_p12, %p3204_p6 }
  0xd2   : > { %p3207_p1 = pnand %p3206_p11, %p3200_p10 }
  0xd4   : > { %3210 = shalt.err (!%p3207_p1)
}
  0xd5   : > { %s3211_s29 = scalar_lea.vmem %s3847_s11, 4096  ;;  %s3395_s30 = smov [#allocation12]  }
  0xd6   : > { %p3212_p2 = scmp.ne.s32.totalorder %s3847_s11, %s3211_s29  ;;  %s3216_s12 = sshll.u32 %s3395_s30, 4  ;;  %s3217_s12 = int_to_ptr.vmem [resolvable:$false] %s3216_s12 }
  0xd7   : > { %s3218_s21 = scalar_lea.vmem %s3217_s12, 8192  ;;  %p3219_p9 = scmp.lt.s32.totalorder %s3847_s11, %s3217_s12 }
  0xd8   : > { %p3214_p0 = pnand %p3212_p2, %p3198_p8  ;;  %p3220_p4 = scmp.lt.s32.totalorder %s3218_s21, %s3211_s29 }
  0xda   : > { %p3215_p3 = pneg %p3214_p0  ;;  %p3221_p5 = por %p3220_p4, %p3219_p9 }
  0xdc   : > { %p3222_p13 = pnand %p3221_p5, %p3215_p3 }
  0xde   : > { %3225 = shalt.err (!%p3222_p13)
}
  0xdf   : > { %s3396_s7 = smov 128   ;;  %s3397_s24 = smov 8  }
  0xe0   : > { %2914 = dma.hbm_to_vmem [thread:$0]  (!%p3843_p7), %s3837_s8, 4096, %s3847_s11, %s3851_s28, %s3396_s7, %s3396_s7, %s3397_s24  }
  0xe1   : > { %s5183_s9 = sld [smem:[#allocation35_spill]] }
  0xe7   : > { %p5184_p8 = scmp.ne.s32.totalorder %s5183_s9, 0 }
  0xe8   : > { %s5185_s5 = sld [smem:[#allocation30_spill]] (!%p5184_p8)  ;;  %s5186_s17 = sld [smem:[#allocation36_spill]] (!%p5184_p8) }
  0xe9   : > { %328 = sbr.rel (%p5184_p8) target bundleno = 999 (0x3e7), region = 40 }
  0xee   : > { %s330_s20 = sand.u32 (!%p5184_p8), 1, %s5185_s5   ;;  %p5187_p10 = scmp.ne.s32.totalorder (!%p5184_p8), %s5186_s17, 0 }
  0xef   : > { %s2246_s22 = sshll.u32 (!%p5184_p8), %s330_s20, 8  ;;  %s331_s30 = scalar_lea.sflag (!%p5184_p8), [#allocation7], %s330_s20 }
  0xf0   : > { %s3882_s29 = scalar_lea.vmem [#allocation6], %s2246_s22 }
  0xf1   : > { %3313 = dma.done.wait (%p5187_p10), %s331_s30, 4096  }
  0xf2   : > { %3315 = vsyncadd (%p5187_p10), %s331_s30, 4294963200  ;;  %s5188_s12 = sld [smem:[#allocation34_spill]]  ;;  %s5189_s21 = sld [smem:[#allocation29_spill]] }
  0xf3   : > { %s5190_s2 = sld [smem:[#allocation38_spill]] }
  0xf8   : > { %s339_s4 = sand.u32 1, %s5188_s12   ;;  %s341_s8 = sand.u32 1, %s5189_s21  }
  0xf9   : > { %s3890_s11 = sshll.u32 %s341_s8, 2  ;;  %s340_s28 = scalar_lea.sflag [#allocation10], %s339_s4 }
  0xfa   : > { %s343_s7 = scalar_lea.vmem [#allocation9], %s3890_s11  ;;  %p5191_p7 = scmp.ne.s32.totalorder %s5190_s2, 0 }
  0xfc   : > { %3317 = dma.done.wait (%p5191_p7), %s340_s28, 64  }
  0xfd   : > { %3319 = vsyncadd (%p5191_p7), %s340_s28, 4294967232  ;;  %p5192_p6 = scmp.eq.s32.totalorder %s5188_s12, 0 }
  0xff   : > { %3321 = dma.done.wait (%p5192_p6), [#allocation10], 1024   ;;  %p5193_p12 = pmov %p5192_p6 }
 0x100   : > { %s3902_s24 = sand.u32 1, %s3338_s1   ;;  %p5194_p11 = scmp.ne.s32.totalorder %s5173_s10, 0 }
 0x101   : > { %3323 = vsyncadd (%p5193_p12), [#allocation10], 4294966272  ;;  %s2249_s9 = sshll.u32 %s3902_s24, 8  ;;  %s353_s5 = scalar_lea.sflag [#allocation13], %s3902_s24 }
 0x102   : > { %s3906_s17 = scalar_lea.vmem [#allocation12], %s2249_s9 }
 0x103   : > { %3325 = dma.done.wait (%p5194_p11), %s353_s5, 4096  }
 0x104   : > { %3327 = vsyncadd (%p5194_p11), %s353_s5, 4294963200  ;;  %s5195_s2 = sld [smem:[#allocation33_spill]]  ;;  %s3913_s22 = scalar_lea.vmem [#allocation14], %s2249_s9 }
 0x105   : > { %s5196_s30 = sld [smem:[#allocation32_spill]] }
 0x10a   : > { %s2251_s20 = sshll.u32 %s5195_s2, 8 }
 0x10b   : > { %p2252_p1 = scmp.ne.s32.totalorder %s5196_s30, 0 }
 0x10c   : > { %v3398_v0 = vmov (!%p2252_p1), 0.0  }
 0x10d   : > { %414 = sbr.rel (%p2252_p1) target bundleno = 285 (0x11d), region = 60  ;;  %415 = vst [vmem:[#allocation2] sm:$0xff] (!%p2252_p1), %v3398_v0  ;;  %416 = vst [vmem:[#allocation2 + $0x8] sm:$0xff] (!%p2252_p1), %v3398_v0 }
 0x10e   : > { %417 = vst [vmem:[#allocation2 + $0x10] sm:$0xff] (!%p2252_p1), %v3398_v0  ;;  %418 = vst [vmem:[#allocation2 + $0x18] sm:$0xff] (!%p2252_p1), %v3398_v0 }
 0x10f   : > { %419 = vst [vmem:[#allocation2 + $0x20] sm:$0xff] (!%p2252_p1), %v3398_v0  ;;  %420 = vst [vmem:[#allocation2 + $0x28] sm:$0xff] (!%p2252_p1), %v3398_v0 }
 0x110   : > { %421 = vst [vmem:[#allocation2 + $0x30] sm:$0xff] (!%p2252_p1), %v3398_v0  ;;  %422 = vst [vmem:[#allocation2 + $0x38] sm:$0xff] (!%p2252_p1), %v3398_v0 }
 0x111   : > { %423 = vst [vmem:[#allocation2 + $0x40] sm:$0xff] (!%p2252_p1), %v3398_v0  ;;  %424 = vst [vmem:[#allocation2 + $0x48] sm:$0xff] (!%p2252_p1), %v3398_v0 }
 0x112   : > { %425 = vst [vmem:[#allocation2 + $0x50] sm:$0xff] (!%p2252_p1), %v3398_v0  ;;  %426 = vst [vmem:[#allocation2 + $0x58] sm:$0xff] (!%p2252_p1), %v3398_v0 }
 0x113   : > { %427 = vst [vmem:[#allocation2 + $0x60] sm:$0xff] (!%p2252_p1), %v3398_v0  ;;  %428 = vst [vmem:[#allocation2 + $0x68] sm:$0xff] (!%p2252_p1), %v3398_v0 }
 0x114   : > { %429 = vst [vmem:[#allocation2 + $0x70] sm:$0xff] %v3398_v0  ;;  %430 = vst [vmem:[#allocation2 + $0x78] sm:$0xff] %v3398_v0 }
 0x115   : > { %431 = vst [vmem:[#allocation2 + $0x80] sm:$0xff] %v3398_v0  ;;  %432 = vst [vmem:[#allocation2 + $0x88] sm:$0xff] %v3398_v0 }
 0x116   : > { %433 = vst [vmem:[#allocation2 + $0x90] sm:$0xff] %v3398_v0  ;;  %434 = vst [vmem:[#allocation2 + $0x98] sm:$0xff] %v3398_v0 }
 0x117   : > { %435 = vst [vmem:[#allocation2 + $0xa0] sm:$0xff] %v3398_v0  ;;  %436 = vst [vmem:[#allocation2 + $0xa8] sm:$0xff] %v3398_v0 }
 0x118   : > { %437 = vst [vmem:[#allocation2 + $0xb0] sm:$0xff] %v3398_v0  ;;  %438 = vst [vmem:[#allocation2 + $0xb8] sm:$0xff] %v3398_v0 }
 0x119   : > { %439 = vst [vmem:[#allocation2 + $0xc0] sm:$0xff] %v3398_v0  ;;  %440 = vst [vmem:[#allocation2 + $0xc8] sm:$0xff] %v3398_v0 }
 0x11a   : > { %441 = vst [vmem:[#allocation2 + $0xd0] sm:$0xff] %v3398_v0  ;;  %442 = vst [vmem:[#allocation2 + $0xd8] sm:$0xff] %v3398_v0 }
 0x11b   : > { %443 = vst [vmem:[#allocation2 + $0xe0] sm:$0xff] %v3398_v0  ;;  %444 = vst [vmem:[#allocation2 + $0xe8] sm:$0xff] %v3398_v0 }
 0x11c   : > { %445 = vst [vmem:[#allocation2 + $0xf0] sm:$0xff] %v3398_v0  ;;  %446 = vst [vmem:[#allocation2 + $0xf8] sm:$0xff] %v3398_v0 }
 0x11d PF: > { %s5197_s10 = sld [smem:[#allocation33_spill]]  ;;  %s5198_s21 = sld [smem:[#allocation32_spill]] }
 0x123   : > { %s447_s12 = sld [smem:[#allocation5 + %s5197_s10]] }
 0x129   : > { %p2253_p2 = scmp.ge.s32.totalorder %s5198_s21, %s447_s12 }
 0x12a   : > { %v3046_v1 = vld [vmem:[%s3882_s29 + $0x40] sm:$0xff] (!%p2253_p2)   ;;  %v3050_v5 = vld [vmem:[%s3882_s29 + $0x48] sm:$0xff] (!%p2253_p2)   ;;  %v3054_v9 = vld [vmem:[%s3882_s29 + $0x50] sm:$0xff] (!%p2253_p2)   ;;  %v455_v22 = vlaneseq (!%p2253_p2)  ;;  %v453_v36 = vstv (!%p2253_p2), %s2251_s20  ;;  %v3399_v49 = vmov (!%p2253_p2), 1.0|1.0   ;;  %v5302_v52 = vmov (!%p2253_p2), 0 }
 0x12b   : > { %451 = sbr.rel (%p2253_p2) target bundleno = 680 (0x2a8), region = 64  ;;  %v3047_v2 = vld [vmem:[%s3882_s29 + $0xc0] sm:$0xff] (!%p2253_p2)   ;;  %2561 = vmatprep.subr.bf16.mxu0 (!%p2253_p2), %v3046_v1  ;;  %v3051_v6 = vld [vmem:[%s3882_s29 + $0xc8] sm:$0xff] (!%p2253_p2)   ;;  %v3055_v10 = vld [vmem:[%s3882_s29 + $0xd0] sm:$0xff] (!%p2253_p2)   ;;  %v5346_v0 = vmov (!%p2253_p2), 0 }
 0x12c   : > { %v3048_v3 = vld [vmem:[%s3882_s29] sm:$0xff] (!%p2253_p2)   ;;  %2673 = vmatprep.subr.bf16.mxu1 (!%p2253_p2), %v3047_v2  ;;  %v3052_v7 = vld [vmem:[%s3882_s29 + $0x8] sm:$0xff] (!%p2253_p2)   ;;  %v3056_v11 = vld [vmem:[%s3882_s29 + $0x10] sm:$0xff] (!%p2253_p2)   ;;  %v3943_v27 = vshrl.u32 (!%p2253_p2), %v455_v22, 7 }
 0x12d   : > { %v3049_v4 = vld [vmem:[%s3882_s29 + $0x80] sm:$0xff] (!%p2253_p2)   ;;  %2562 = vmatpush3.bf16.msra.mxu0 (!%p2253_p2), %v3048_v3  ;;  %v3053_v8 = vld [vmem:[%s3882_s29 + $0x88] sm:$0xff] (!%p2253_p2)   ;;  %v3057_v12 = vld [vmem:[%s3882_s29 + $0x90] sm:$0xff] (!%p2253_p2)  }
 0x12e   : > { %2674 = vmatpush3.bf16.msra.mxu1 (!%p2253_p2), %v3049_v4  ;;  %2563 = vmatprep.subr.bf16.mxu0 (!%p2253_p2), %v3050_v5  ;;  %v3058_v13 = vld [vmem:[%s3882_s29 + $0x58] sm:$0xff] (!%p2253_p2)   ;;  %v3062_v17 = vld [vmem:[%s3882_s29 + $0x60] sm:$0xff] (!%p2253_p2)   ;;  %v3066_v21 = vld [vmem:[%s3882_s29 + $0x68] sm:$0xff] (!%p2253_p2)   ;;  %v494_v32 = vsub.s32 (!%p2253_p2), 1, %v3943_v27  ;;  %v502_v34 = vsub.s32 (!%p2253_p2), 3, %v3943_v27  ;;  %v490_v37 = vsub.s32 (!%p2253_p2), 0, %v3943_v27 }
 0x12f   : > { %2675 = vmatprep.subr.bf16.mxu1 (!%p2253_p2), %v3051_v6  ;;  %v3059_v14 = vld [vmem:[%s3882_s29 + $0xd8] sm:$0xff] (!%p2253_p2)   ;;  %v3063_v18 = vld [vmem:[%s3882_s29 + $0xe0] sm:$0xff] (!%p2253_p2)   ;;  %v3067_v23 = vld [vmem:[%s3882_s29 + $0xe8] sm:$0xff] (!%p2253_p2)   ;;  %v498_v39 = vsub.s32 (!%p2253_p2), 2, %v3943_v27  ;;  %v457_v42 = vadd.s32 (!%p2253_p2), 8, %v3943_v27  ;;  %v458_v43 = vadd.s32 (!%p2253_p2), 16, %v3943_v27 }
 0x130   : > { %v3060_v15 = vld [vmem:[%s3882_s29 + $0x18] sm:$0xff] (!%p2253_p2)   ;;  %v3064_v19 = vld [vmem:[%s3882_s29 + $0x20] sm:$0xff] (!%p2253_p2)   ;;  %v3068_v24 = vld [vmem:[%s3882_s29 + $0x28] sm:$0xff] (!%p2253_p2)   ;;  %v459_v44 = vadd.s32 (!%p2253_p2), 24, %v3943_v27  ;;  %v460_v50 = vadd.s32 (!%p2253_p2), 32, %v3943_v27  ;;  %v461_v51 = vadd.s32 (!%p2253_p2), 40, %v3943_v27 }
 0x131   : > { %2564 = vmatpush3.bf16.msra.mxu0 (!%p2253_p2), %v3052_v7  ;;  %v3061_v16 = vld [vmem:[%s3882_s29 + $0x98] sm:$0xff] (!%p2253_p2)   ;;  %v3065_v20 = vld [vmem:[%s3882_s29 + $0xa0] sm:$0xff] (!%p2253_p2)   ;;  %v3069_v25 = vld [vmem:[%s3882_s29 + $0xa8] sm:$0xff] (!%p2253_p2)   ;;  %v4008_v53 = vadd.s32 (!%p2253_p2), 48, %v3943_v27  ;;  %v4015_v55 = vadd.s32 (!%p2253_p2), 56, %v3943_v27  ;;  %v4018_v56 = vadd.s32 (!%p2253_p2), 64, %v3943_v27 }
 0x132   : > { %2676 = vmatpush3.bf16.msra.mxu1 %v3053_v8  ;;  %2565 = vmatprep.subr.bf16.mxu0 %v3054_v9  ;;  %v3070_v26 = vld [vmem:[%s3882_s29 + $0x70] sm:$0xff]   ;;  %v3074_v31 = vld [vmem:[%s3882_s29 + $0x78] sm:$0xff]   ;;  %v452_v40 = vld [vmem:[%s343_s7] sm:$0xf]  ;;  %v4021_v57 = vadd.s32 72, %v3943_v27  ;;  %v4024_v58 = vadd.s32 80, %v3943_v27 }
 0x133   : > { %2677 = vmatprep.subr.bf16.mxu1 %v3055_v10  ;;  %v3071_v28 = vld [vmem:[%s3882_s29 + $0xf0] sm:$0xff]   ;;  %v3075_v33 = vld [vmem:[%s3882_s29 + $0xf8] sm:$0xff]   ;;  %v454_v41 = vsub.s32 %v452_v40, %v453_v36  ;;  %v4031_v60 = vadd.s32 88, %v3943_v27  ;;  %v4034_v61 = vadd.s32 96, %v3943_v27  ;;  %v4037_v62 = vadd.s32 104, %v3943_v27 }
 0x134   : > { %v3072_v29 = vld [vmem:[%s3882_s29 + $0x30] sm:$0xff]   ;;  %v3076_v35 = vld [vmem:[%s3882_s29 + $0x38] sm:$0xff]   ;;  %v4040_v63 = vadd.s32 144, %v3943_v27  ;;  %v4047_v1 = vadd.s32 152, %v3943_v27  ;;  %v4050_v2 = vadd.s32 160, %v3943_v27  ;;  %v4053_v3 = vadd.s32 168, %v3943_v27 }
 0x135   : > { %2566 = vmatpush3.bf16.msra.mxu0 %v3056_v11  ;;  %v3073_v30 = vld [vmem:[%s3882_s29 + $0xb0] sm:$0xff]   ;;  %v3077_v38 = vld [vmem:[%s3882_s29 + $0xb8] sm:$0xff]   ;;  %v3963_v45 = vrot.slane %v454_v41, %v494_v32  ;;  %v3965_v46 = vrot.slane %v454_v41, %v502_v34  ;;  %v3967_v47 = vrot.slane %v454_v41, %v490_v37  ;;  %v3969_v48 = vrot.slane %v454_v41, %v498_v39 }
 0x136   : > { %2678 = vmatpush3.bf16.msra.mxu1 %v3057_v12  ;;  %2567 = vmatprep.subr.bf16.mxu0 %v3058_v13  ;;  %v4056_v4 = vadd.s32 176, %v3943_v27  ;;  %v4062_v5 = vadd.s32 184, %v3943_v27  ;;  %v4065_v6 = vadd.s32 192, %v3943_v27  ;;  %v4068_v7 = vadd.s32 200, %v3943_v27 }
 0x137   : > { %2679 = vmatprep.subr.bf16.mxu1 %v3059_v14  ;;  %vm505_vm0 = vcmp.eq.s32.totalorder %v3963_v45, %v3943_v27  ;;  %vm509_vm1 = vcmp.eq.s32.totalorder %v3963_v45, %v457_v42  ;;  %vm507_vm2 = vcmp.eq.s32.totalorder %v3965_v46, %v3943_v27  ;;  %vm511_vm3 = vcmp.eq.s32.totalorder %v3965_v46, %v457_v42 }
 0x138   : > { %vm2414_vm4 = vmpackc.low %vm509_vm1, %vm505_vm0  ;;  %vm504_vm5 = vcmp.eq.s32.totalorder %v3967_v47, %v3943_v27  ;;  %vm508_vm6 = vcmp.eq.s32.totalorder %v3967_v47, %v457_v42  ;;  %vm506_vm7 = vcmp.eq.s32.totalorder %v3969_v48, %v3943_v27  ;;  %vm510_vm8 = vcmp.eq.s32.totalorder %v3969_v48, %v457_v42 }
 0x139   : > { %2568 = vmatpush3.bf16.msra.mxu0 %v3060_v15  ;;  %2415 = vmatprep.mubr.msk.bf16.mxu0 %vm2414_vm4, %v3399_v49  ;;  %vm2478_vm9 = vmpackc.low %vm511_vm3, %vm507_vm2  ;;  %vm513_vm10 = vcmp.eq.s32.totalorder %v3963_v45, %v458_v43  ;;  %vm517_vm11 = vcmp.eq.s32.totalorder %v3963_v45, %v459_v44  ;;  %vm515_vm13 = vcmp.eq.s32.totalorder %v3965_v46, %v458_v43  ;;  %v4071_v8 = vadd.s32 208, %v3943_v27 }
 0x13a   : > { %2680 = vmatpush3.bf16.msra.mxu1 %v3061_v16  ;;  %2569 = vmatprep.subr.bf16.mxu0 %v3062_v17  ;;  %vm2416_vm12 = vmpackc.low %vm508_vm6, %vm504_vm5  ;;  %vm519_vm14 = vcmp.eq.s32.totalorder %v3965_v46, %v459_v44  ;;  %vm512_vm1 = vcmp.eq.s32.totalorder %v3967_v47, %v458_v43  ;;  %vm516_vm2 = vcmp.eq.s32.totalorder %v3967_v47, %v459_v44  ;;  %v4082_v9 = vadd.s32 216, %v3943_v27  ;;  %v952_v16 = vld [vmem:[#allocation2] sm:$0xff] }
 0x13b   : > { %2681 = vmatprep.subr.bf16.mxu1 %v3063_v18  ;;  %2479 = vmatprep.mubr.msk.bf16.mxu1 %vm2478_vm9, %v3399_v49  ;;  %vm2480_vm15 = vmpackc.low %vm510_vm8, %vm506_vm7  ;;  %vm514_vm4 = vcmp.eq.s32.totalorder %v3969_v48, %v458_v43  ;;  %vm518_vm5 = vcmp.eq.s32.totalorder %v3969_v48, %v459_v44  ;;  %vm521_vm6 = vcmp.eq.s32.totalorder %v3963_v45, %v460_v50  ;;  %v4085_v10 = vadd.s32 224, %v3943_v27 }
 0x13c   : > { %vm2418_vm0 = vmpackc.low %vm517_vm11, %vm513_vm10  ;;  %vm525_vm7 = vcmp.eq.s32.totalorder %v3963_v45, %v461_v51  ;;  %vm523_vm9 = vcmp.eq.s32.totalorder %v3965_v46, %v460_v50  ;;  %vm527_vm10 = vcmp.eq.s32.totalorder %v3965_v46, %v461_v51  ;;  %v4093_v11 = vadd.s32 232, %v3943_v27 }
 0x13d   : > { %2570 = vmatpush3.bf16.msra.mxu0 %v3064_v19  ;;  %vm2482_vm3 = vmpackc.low %vm519_vm14, %vm515_vm13  ;;  %vm520_vm14 = vcmp.eq.s32.totalorder %v3967_v47, %v460_v50  ;;  %v4096_v12 = vadd.s32 240, %v3943_v27  ;;  %v4198_v17 = vadd.s32 248, %v3943_v27  ;;  %v5250_v32 = vmov 0 }
 0x13e   : > { %2682 = vmatpush3.bf16.msra.mxu1 %v3065_v20  ;;  %2571 = vmatprep.subr.bf16.mxu0 %v3066_v21  ;;  %vm4001_vm8 = vmpackc.low %vm516_vm2, %vm512_vm1  ;;  %vm526_vm1 = vcmp.eq.s32.totalorder %v3969_v48, %v461_v51  ;;  %vm529_vm2 = vcmp.eq.s32.totalorder %v3963_v45, %v4008_v53  ;;  %v5258_v34 = vmov 0  ;;  %v5266_v36 = vmov 0  ;;  %v953_v21 = vld [vmem:[#allocation2 + $0x8] sm:$0xff] }
 0x13f   : > { %2683 = vmatprep.subr.bf16.mxu1 %v3067_v23  ;;  %vm4010_vm11 = vmpackc.low %vm518_vm5, %vm514_vm4  ;;  %vm531_vm4 = vcmp.eq.s32.totalorder %v3965_v46, %v4008_v53  ;;  %vm535_vm5 = vcmp.eq.s32.totalorder %v3965_v46, %v4015_v55  ;;  %v5268_v37 = vmov 0  ;;  %v5274_v39 = vmov 0 }
 0x140   : > { %vm4042_vm13 = vmpackc.low %vm527_vm10, %vm523_vm9  ;;  %vm534_vm10 = vcmp.eq.s32.totalorder %v3969_v48, %v4015_v55  ;;  %v5276_v40 = vmov 0  ;;  %v5280_v41 = vmov 0  ;;  %v5282_v42 = vmov 0 }
 0x141   : > { %2572 = vmatpush3.bf16.msra.mxu0 %v3068_v24  ;;  %v472_v43 = vadd.s32 128, %v3943_v27  ;;  %v473_v44 = vadd.s32 136, %v3943_v27 }
 0x142   : > { %2684 = vmatpush3.bf16.msra.mxu1 %v3069_v25  ;;  %2573 = vmatprep.subr.bf16.mxu0 %v3070_v26  ;;  %v5241_v26 = vmov 0 }
 0x143   : > { %2685 = vmatprep.subr.bf16.mxu1 %v3071_v28  ;;  %v5245_v28 = vmov 0 }
 0x145   : > { %2574 = vmatpush3.bf16.msra.mxu0 %v3072_v29  ;;  %v5248_v29 = vmov 0 }
 0x146   : > { %2686 = vmatpush3.bf16.msra.mxu1 %v3073_v30  ;;  %2575 = vmatprep.subr.bf16.mxu0 %v3074_v31  ;;  %v470_v30 = vadd.s32 112, %v3943_v27  ;;  %v471_v31 = vadd.s32 120, %v3943_v27  ;;  %v5291_v27 = vmov 0 }
 0x147   : > { %2687 = vmatprep.subr.bf16.mxu1 %v3075_v33  ;;  %v5254_v33 = vmov 0 }
 0x149   : > { %2576 = vmatpush3.bf16.msra.mxu0 %v3076_v35  ;;  %v5262_v35 = vmov 0 }
 0x14a   : > { %2688 = vmatpush3.bf16.msra.mxu1 %v3077_v38  ;;  %v5272_v38 = vmov 0 }
 0x14c   : > { %2417 = vmatmul.mubr.msk.bf16.vlgmr.msra.gmra.mrb[0].mxu0 %vm2416_vm12, %v3399_v49  ;;  %vm4026_vm12 = vmpackc.low %vm525_vm7, %vm521_vm6  ;;  %vm528_vm7 = vcmp.eq.s32.totalorder %v3967_v47, %v4008_v53 }
 0x14d   : > { %2481 = vmatmul.mubr.msk.bf16.vlgmr.msra.gmra.mrb[0].mxu1 %vm2480_vm15, %v3399_v49  ;;  %2419 = vmatprep.mubr.msk.bf16.mxu0 %vm2418_vm0, %v3399_v49  ;;  %vm524_vm15 = vcmp.eq.s32.totalorder %v3967_v47, %v461_v51  ;;  %vm522_vm0 = vcmp.eq.s32.totalorder %v3969_v48, %v460_v50  ;;  %v5286_v50 = vmov 0  ;;  %v5297_v51 = vmov 0 }
 0x14e   : > { %2483 = vmatprep.mubr.msk.bf16.mxu1 %vm2482_vm3, %v3399_v49  ;;  %vm533_vm3 = vcmp.eq.s32.totalorder %v3963_v45, %v4015_v55  ;;  %vm4106_vm6 = vmpackc.low %vm524_vm15, %vm520_vm14  ;;  %vm543_vm15 = vcmp.eq.s32.totalorder %v3965_v46, %v4021_v57 }
 0x14f   : > { %vm4130_vm9 = vmpackc.low %vm533_vm3, %vm529_vm2  ;;  %vm538_vm3 = vcmp.eq.s32.totalorder %v3969_v48, %v4018_v56 }
 0x150   : > { %vm4150_vm2 = vmpackc.low %vm535_vm5, %vm531_vm4  ;;  %vm545_vm5 = vcmp.eq.s32.totalorder %v3963_v45, %v4024_v58  ;;  %vm555_vm4 = vcmp.eq.s32.totalorder %v3965_v46, %v4034_v61 }
 0x154   : > { %2421 = vmatmul.mubr.msk.bf16.gmra.mrb[4].mxu0 %vm4001_vm8, %v3399_v49  ;;  %vm532_vm8 = vcmp.eq.s32.totalorder %v3967_v47, %v4015_v55 }
 0x155   : > { %2485 = vmatmul.mubr.msk.bf16.gmra.mrb[4].mxu1 %vm4010_vm11, %v3399_v49  ;;  %2423 = vmatprep.mubr.msk.bf16.mxu0 %vm4026_vm12, %v3399_v49  ;;  %vm4118_vm11 = vmpackc.low %vm526_vm1, %vm522_vm0  ;;  %vm536_vm0 = vcmp.eq.s32.totalorder %v3967_v47, %v4018_v56  ;;  %vm549_vm12 = vcmp.eq.s32.totalorder %v3963_v45, %v4031_v60  ;;  %vm5261_vm1 = vcmp.eq.s32.totalorder %v3967_v47, %v4047_v1 }
 0x156   : > { %2487 = vmatprep.mubr.msk.bf16.mxu1 %vm4042_vm13, %v3399_v49  ;;  %vm4233_vm14 = vmpackc.low %vm532_vm8, %vm528_vm7  ;;  %vm5218_vm7 = vcmp.eq.s32.totalorder %v3969_v48, %v4008_v53  ;;  %vm5260_vm13 = vcmp.eq.s32.totalorder %v3967_v47, %v4040_v63  ;;  %v5306_v53 = vmov 0 }
 0x157   : > { %vm4253_vm8 = vmpackc.low %vm534_vm10, %vm5218_vm7  ;;  %vm5222_vm10 = vcmp.eq.s32.totalorder %v3963_v45, %v4021_v57 }
 0x15c   : > { %2425 = vmatmul.mubr.msk.bf16.gmra.mrb[8].mxu0 %vm4106_vm6, %v3399_v49  ;;  %vm547_vm6 = vcmp.eq.s32.totalorder %v3965_v46, %v4024_v58 }
 0x15d   : > { %2489 = vmatmul.mubr.msk.bf16.gmra.mrb[8].mxu1 %vm4118_vm11, %v3399_v49  ;;  %2427 = vmatprep.mubr.msk.bf16.mxu0 %vm4130_vm9, %v3399_v49  ;;  %vm5221_vm11 = vcmp.eq.s32.totalorder %v3963_v45, %v4018_v56 }
 0x15e   : > { %2491 = vmatprep.mubr.msk.bf16.mxu1 %vm4150_vm2, %v3399_v49  ;;  %vm4271_vm7 = vmpackc.low %vm5222_vm10, %vm5221_vm11  ;;  %vm5225_vm2 = vcmp.eq.s32.totalorder %v3965_v46, %v4018_v56  ;;  %vm559_vm10 = vcmp.eq.s32.totalorder %v3965_v46, %v4037_v62  ;;  %v956_v56 = vld [vmem:[#allocation2 + $0x20] sm:$0xff] }
 0x15f   : > { %vm4289_vm11 = vmpackc.low %vm543_vm15, %vm5225_vm2 }
 0x160   : > { %vm4427_vm9 = vmpackc.low %vm559_vm10, %vm555_vm4  ;;  %vm552_vm4 = vcmp.eq.s32.totalorder %v3967_v47, %v4034_v61  ;;  %vm556_vm10 = vcmp.eq.s32.totalorder %v3967_v47, %v4037_v62 }
 0x161   : > { %v5251_v32 = vsel %vm4427_vm9, 4294967295, %v5250_v32  ;;  %vm5265_vm9 = vcmp.eq.s32.totalorder %v3969_v48, %v4047_v1 }
 0x164   : > { %2429 = vmatmul.mubr.msk.bf16.gmra.mrb[12].mxu0 %vm4233_vm14, %v3399_v49  ;;  %vm5228_vm14 = vcmp.eq.s32.totalorder %v3967_v47, %v4021_v57 }
 0x165   : > { %2493 = vmatmul.mubr.msk.bf16.gmra.mrb[12].mxu1 %vm4253_vm8, %v3399_v49  ;;  %2431 = vmatprep.mubr.msk.bf16.mxu0 %vm4271_vm7, %v3399_v49  ;;  %vm4324_vm2 = vmpackc.low %vm5228_vm14, %vm536_vm0  ;;  %vm5231_vm0 = vcmp.eq.s32.totalorder %v3969_v48, %v4021_v57  ;;  %vm5239_vm14 = vcmp.eq.s32.totalorder %v3967_v47, %v4024_v58  ;;  %vm5243_vm8 = vcmp.eq.s32.totalorder %v3969_v48, %v4024_v58 }
 0x166   : > { %2495 = vmatprep.mubr.msk.bf16.mxu1 %vm4289_vm11, %v3399_v49  ;;  %vm4343_vm7 = vmpackc.low %vm5231_vm0, %vm538_vm3  ;;  %vm557_vm0 = vcmp.eq.s32.totalorder %v3963_v45, %v4037_v62  ;;  %vm5244_vm11 = vcmp.eq.s32.totalorder %v3969_v48, %v4031_v60 }
 0x167   : > { %vm4361_vm3 = vmpackc.low %vm549_vm12, %vm545_vm5  ;;  %vm5236_vm12 = vcmp.eq.s32.totalorder %v3965_v46, %v4031_v60 }
 0x168   : > { %vm4379_vm5 = vmpackc.low %vm5236_vm12, %vm547_vm6  ;;  %vm5240_vm6 = vcmp.eq.s32.totalorder %v3967_v47, %v4031_v60 }
 0x169   : > { %vm4397_vm12 = vmpackc.low %vm5240_vm6, %vm5239_vm14  ;;  %vm5247_vm14 = vcmp.eq.s32.totalorder %v3963_v45, %v4034_v61 }
 0x16a   : > { %v5242_v26 = vsel %vm4397_vm12, 4294967295, %v5241_v26  ;;  %vm4411_vm15 = vmpackc.low %vm5244_vm11, %vm5243_vm8  ;;  %vm5252_vm8 = vcmp.eq.s32.totalorder %v3963_v45, %v4040_v63  ;;  %vm5253_vm11 = vcmp.eq.s32.totalorder %v3963_v45, %v4047_v1 }
 0x16b   : > { %v5246_v28 = vsel %vm4411_vm15, 4294967295, %v5245_v28  ;;  %vm4418_vm6 = vmpackc.low %vm557_vm0, %vm5247_vm14  ;;  %vm554_vm14 = vcmp.eq.s32.totalorder %v3969_v48, %v4034_v61  ;;  %v957_v61 = vld [vmem:[#allocation2 + $0x28] sm:$0xff] }
 0x16c   : > { %v5249_v29 = vsel %vm4418_vm6, 4294967295, %v5248_v29  ;;  %2433 = vmatmul.mubr.msk.bf16.gmra.mrb[16].mxu0 %vm4324_vm2, %v3399_v49  ;;  %vm4443_vm0 = vmpackc.low %vm5253_vm11, %vm5252_vm8  ;;  %vm5256_vm2 = vcmp.eq.s32.totalorder %v3965_v46, %v4040_v63  ;;  %vm561_vm8 = vcmp.eq.s32.totalorder %v3963_v45, %v470_v30  ;;  %vm565_vm11 = vcmp.eq.s32.totalorder %v3963_v45, %v471_v31 }
 0x16d   : > { %2497 = vmatmul.mubr.msk.bf16.gmra.mrb[16].mxu1 %vm4343_vm7, %v3399_v49  ;;  %2435 = vmatprep.mubr.msk.bf16.mxu0 %vm4361_vm3, %v3399_v49  ;;  %v5255_v33 = vsel %vm4443_vm0, 4294967295, %v5254_v33  ;;  %vm5257_vm7 = vcmp.eq.s32.totalorder %v3965_v46, %v4047_v1  ;;  %vm5264_vm0 = vcmp.eq.s32.totalorder %v3969_v48, %v4040_v63  ;;  %vm4492_vm15 = vmpackc.low %vm556_vm10, %vm552_vm4  ;;  %vm5279_vm4 = vcmp.eq.s32.totalorder %v3965_v46, %v4053_v3 }
 0x16e   : > { %2499 = vmatprep.mubr.msk.bf16.mxu1 %vm4379_vm5, %v3399_v49  ;;  %vm4460_vm3 = vmpackc.low %vm5257_vm7, %vm5256_vm2  ;;  %vm558_vm5 = vcmp.eq.s32.totalorder %v3969_v48, %v4037_v62  ;;  %vm563_vm7 = vcmp.eq.s32.totalorder %v3965_v46, %v470_v30  ;;  %v5269_v37 = vsel %vm4492_vm15, 4294967295, %v5268_v37  ;;  %v5335_v62 = vmov 0 }
 0x16f   : > { %v5259_v34 = vsel %vm4460_vm3, 4294967295, %v5258_v34  ;;  %vm4476_vm2 = vmpackc.low %vm5261_vm1, %vm5260_vm13  ;;  %vm567_vm3 = vcmp.eq.s32.totalorder %v3965_v46, %v471_v31  ;;  %vm5270_vm13 = vcmp.eq.s32.totalorder %v3963_v45, %v4050_v2  ;;  %vm5271_vm1 = vcmp.eq.s32.totalorder %v3963_v45, %v4053_v3 }
 0x170   : > { %v5263_v35 = vsel %vm4476_vm2, 4294967295, %v5262_v35  ;;  %vm4488_vm6 = vmpackc.low %vm5265_vm9, %vm5264_vm0  ;;  %vm5278_vm0 = vcmp.eq.s32.totalorder %v3965_v46, %v4050_v2  ;;  %v5341_v63 = vmov 0  ;;  %v5350_v1 = vmov 0 }
 0x171   : > { %v5267_v36 = vsel %vm4488_vm6, 4294967295, %v5266_v36  ;;  %vm4502_vm2 = vmpackc.low %vm5271_vm1, %vm5270_vm13 }
 0x172   : > { %v5273_v38 = vsel %vm4502_vm2, 4294967295, %v5272_v38  ;;  %vm4506_vm12 = vmpackc.low %vm558_vm5, %vm554_vm14  ;;  %vm5284_vm14 = vcmp.eq.s32.totalorder %v3967_v47, %v4050_v2  ;;  %vm5285_vm5 = vcmp.eq.s32.totalorder %v3967_v47, %v4053_v3  ;;  %vm5305_vm2 = vcmp.eq.s32.totalorder %v3967_v47, %v4062_v5 }
 0x173   : > { %v5275_v39 = vsel %vm4506_vm12, 4294967295, %v5274_v39  ;;  %vm4510_vm9 = vmpackc.low %vm565_vm11, %vm561_vm8  ;;  %vm5289_vm11 = vcmp.eq.s32.totalorder %v3969_v48, %v4050_v2  ;;  %v5354_v2 = vmov 0 }
 0x174   : > { %v5277_v40 = vsel %vm4510_vm9, 4294967295, %v5276_v40  ;;  %vm4520_vm10 = vmpackc.low %vm5279_vm4, %vm5278_vm0  ;;  %vm5293_vm0 = vnez %v5246_v28  ;;  %vm5294_vm4 = vnez %v5249_v29 }
 0x175   : > { %v5281_v41 = vsel %vm4520_vm10, 4294967295, %v5280_v41  ;;  %vm4524_vm13 = vmpackc.low %vm567_vm3, %vm563_vm7  ;;  %vm5288_vm3 = vnez %v5242_v26  ;;  %vm5290_vm7 = vcmp.eq.s32.totalorder %v3969_v48, %v4053_v3  ;;  %2501 = vmatmul.mubr.msk.bf16.gmra.mrb[20].mxu1 %vm5293_vm0, %v3399_v49  ;;  %vm564_vm0 = vcmp.eq.s32.totalorder %v3967_v47, %v471_v31 }
 0x176   : > { %v5283_v42 = vsel %vm4524_vm13, 4294967295, %v5282_v42  ;;  %vm4536_vm8 = vmpackc.low %vm5285_vm5, %vm5284_vm14  ;;  %2437 = vmatmul.mubr.msk.bf16.gmra.mrb[20].mxu0 %vm5288_vm3, %v3399_v49  ;;  %vm5295_vm14 = vcmp.eq.s32.totalorder %v3963_v45, %v4056_v4  ;;  %vm5296_vm5 = vcmp.eq.s32.totalorder %v3963_v45, %v4062_v5  ;;  %vm5304_vm10 = vcmp.eq.s32.totalorder %v3967_v47, %v4056_v4 }
 0x177   : > { %v5287_v50 = vsel %vm4536_vm8, 4294967295, %v5286_v50  ;;  %vm4549_vm1 = vmpackc.low %vm5290_vm7, %vm5289_vm11  ;;  %2439 = vmatprep.mubr.msk.bf16.mxu0 %vm5294_vm4, %v3399_v49  ;;  %vm5299_vm11 = vnez %v5251_v32  ;;  %vm560_vm7 = vcmp.eq.s32.totalorder %v3967_v47, %v470_v30  ;;  %vm5300_vm4 = vcmp.eq.s32.totalorder %v3965_v46, %v4056_v4 }
 0x178   : > { %v5292_v27 = vsel %vm4549_vm1, 4294967295, %v5291_v27  ;;  %vm4565_vm3 = vmpackc.low %vm5296_vm5, %vm5295_vm14  ;;  %2503 = vmatprep.mubr.msk.bf16.mxu1 %vm5299_vm11, %v3399_v49  ;;  %vm5301_vm1 = vcmp.eq.s32.totalorder %v3965_v46, %v4062_v5  ;;  %vm562_vm14 = vcmp.eq.s32.totalorder %v3969_v48, %v470_v30  ;;  %vm566_vm5 = vcmp.eq.s32.totalorder %v3969_v48, %v471_v31 }
 0x179   : > { %v5298_v51 = vsel %vm4565_vm3, 4294967295, %v5297_v51  ;;  %vm4580_vm8 = vmpackc.low %vm5301_vm1, %vm5300_vm4  ;;  %vm569_vm11 = vcmp.eq.s32.totalorder %v3963_v45, %v472_v43  ;;  %vm573_vm3 = vcmp.eq.s32.totalorder %v3963_v45, %v473_v44  ;;  %vm571_vm1 = vcmp.eq.s32.totalorder %v3965_v46, %v472_v43 }
 0x17a   : > { %v5303_v52 = vsel %vm4580_vm8, 4294967295, %v5302_v52  ;;  %vm4594_vm6 = vmpackc.low %vm5305_vm2, %vm5304_vm10  ;;  %vm575_vm4 = vcmp.eq.s32.totalorder %v3965_v46, %v473_v44  ;;  %vm5308_vm8 = vcmp.eq.s32.totalorder %v3969_v48, %v4056_v4  ;;  %vm5309_vm13 = vcmp.eq.s32.totalorder %v3969_v48, %v4062_v5 }
 0x17b   : > { %v5307_v53 = vsel %vm4594_vm6, 4294967295, %v5306_v53  ;;  %vm4606_vm9 = vmpackc.low %vm5309_vm13, %vm5308_vm8  ;;  %vm5314_vm2 = vcmp.eq.s32.totalorder %v3963_v45, %v4065_v6  ;;  %vm5315_vm10 = vcmp.eq.s32.totalorder %v3963_v45, %v4068_v7  ;;  %vm5322_vm8 = vcmp.eq.s32.totalorder %v3965_v46, %v4065_v6 }
 0x17c   : > { %vm4610_vm12 = vmpackc.low %vm564_vm0, %vm560_vm7  ;;  %vm5323_vm7 = vcmp.eq.s32.totalorder %v3965_v46, %v4068_v7  ;;  %v5358_v3 = vmov 0  ;;  %v5362_v4 = vmov 0  ;;  %v5366_v5 = vmov 0 }
 0x17d   : > { %vm4620_vm6 = vmpackc.low %vm5315_vm10, %vm5314_vm2 }
 0x17e   : > { %vm4624_vm15 = vmpackc.low %vm566_vm5, %vm562_vm14  ;;  %vm5329_vm14 = vcmp.eq.s32.totalorder %v3967_v47, %v4068_v7 }
 0x17f   : > { %vm4628_vm13 = vmpackc.low %vm573_vm3, %vm569_vm11  ;;  %vm5328_vm3 = vcmp.eq.s32.totalorder %v3967_v47, %v4065_v6  ;;  %vm5332_vm11 = vnez %v5269_v37 }
 0x180   : > { %vm4638_vm0 = vmpackc.low %vm5323_vm7, %vm5322_vm8  ;;  %2441 = vmatmul.mubr.msk.bf16.gmra.mrb[24].mxu0 %vm5332_vm11, %v3399_v49  ;;  %vm5337_vm8 = vnez %v5275_v39  ;;  %vm5338_vm7 = vnez %v5277_v40  ;;  %v955_v39 = vld [vmem:[#allocation2 + $0x18] sm:$0xff] }
 0x181   : > { %vm4642_vm2 = vmpackc.low %vm575_vm4, %vm571_vm1  ;;  %vm5333_vm1 = vcmp.eq.s32.totalorder %v3969_v48, %v4065_v6  ;;  %vm5334_vm4 = vcmp.eq.s32.totalorder %v3969_v48, %v4068_v7  ;;  %2505 = vmatmul.mubr.msk.bf16.gmra.mrb[24].mxu1 %vm5337_vm8, %v3399_v49  ;;  %2443 = vmatprep.mubr.msk.bf16.mxu0 %vm5338_vm7, %v3399_v49  ;;  %vm5345_vm8 = vcmp.eq.s32.totalorder %v3965_v46, %v4082_v9  ;;  %v5370_v6 = vmov 0 }
 0x182   : > { %vm4652_vm5 = vmpackc.low %vm5329_vm14, %vm5328_vm3  ;;  %vm5339_vm3 = vcmp.eq.s32.totalorder %v3963_v45, %v4071_v8  ;;  %vm5340_vm14 = vcmp.eq.s32.totalorder %v3963_v45, %v4082_v9  ;;  %v5374_v7 = vmov 0 }
 0x183   : > { %vm4665_vm10 = vmpackc.low %vm5334_vm4, %vm5333_vm1  ;;  %vm5343_vm1 = vnez %v5283_v42  ;;  %vm5344_vm4 = vcmp.eq.s32.totalorder %v3965_v46, %v4071_v8 }
 0x184   : > { %v5336_v62 = vsel %vm4665_vm10, 4294967295, %v5335_v62  ;;  %vm4681_vm11 = vmpackc.low %vm5340_vm14, %vm5339_vm3  ;;  %2507 = vmatprep.mubr.msk.bf16.mxu1 %vm5343_vm1, %v3399_v49  ;;  %vm5348_vm3 = vcmp.eq.s32.totalorder %v3967_v47, %v4071_v8  ;;  %vm5349_vm14 = vcmp.eq.s32.totalorder %v3967_v47, %v4082_v9  ;;  %vm5352_vm1 = vcmp.eq.s32.totalorder %v3969_v48, %v4071_v8 }
 0x185   : > { %v5342_v63 = vsel %vm4681_vm11, 4294967295, %v5341_v63  ;;  %vm4694_vm7 = vmpackc.low %vm5345_vm8, %vm5344_vm4  ;;  %vm5353_vm10 = vcmp.eq.s32.totalorder %v3969_v48, %v4082_v9  ;;  %vm5356_vm8 = vcmp.eq.s32.totalorder %v3963_v45, %v4085_v10 }
 0x186   : > { %v5347_v0 = vsel %vm4694_vm7, 4294967295, %v5346_v0  ;;  %vm4704_vm11 = vmpackc.low %vm5349_vm14, %vm5348_vm3  ;;  %vm5357_vm7 = vcmp.eq.s32.totalorder %v3963_v45, %v4093_v11  ;;  %vm5360_vm14 = vcmp.eq.s32.totalorder %v3965_v46, %v4085_v10 }
 0x187   : > { %v5351_v1 = vsel %vm4704_vm11, 4294967295, %v5350_v1  ;;  %vm4714_vm4 = vmpackc.low %vm5353_vm10, %vm5352_vm1  ;;  %vm5361_vm11 = vcmp.eq.s32.totalorder %v3965_v46, %v4093_v11  ;;  %vm5364_vm1 = vcmp.eq.s32.totalorder %v3967_v47, %v4085_v10 }
 0x188   : > { %v5355_v2 = vsel %vm4714_vm4, 4294967295, %v5354_v2  ;;  %vm4724_vm3 = vmpackc.low %vm5357_vm7, %vm5356_vm8  ;;  %vm5365_vm4 = vcmp.eq.s32.totalorder %v3967_v47, %v4093_v11  ;;  %2445 = vmatmul.mubr.msk.bf16.gmra.mrb[28].mxu0 %vm4610_vm12, %v3399_v49  ;;  %vm5369_vm8 = vcmp.eq.s32.totalorder %v3969_v48, %v4093_v11  ;;  %vm5372_vm12 = vcmp.eq.s32.totalorder %v3963_v45, %v4096_v12 }
 0x189   : > { %v5359_v3 = vsel %vm4724_vm3, 4294967295, %v5358_v3  ;;  %vm4734_vm10 = vmpackc.low %vm5361_vm11, %vm5360_vm14  ;;  %vm5368_vm11 = vcmp.eq.s32.totalorder %v3969_v48, %v4085_v10  ;;  %2509 = vmatmul.mubr.msk.bf16.gmra.mrb[28].mxu1 %vm4624_vm15, %v3399_v49  ;;  %2447 = vmatprep.mubr.msk.bf16.mxu0 %vm4628_vm13, %v3399_v49  ;;  %vm568_vm15 = vcmp.eq.s32.totalorder %v3967_v47, %v472_v43  ;;  %vm5376_vm13 = vcmp.eq.s32.totalorder %v3965_v46, %v4096_v12 }
 0x18a   : > { %v5363_v4 = vsel %vm4734_vm10, 4294967295, %v5362_v4  ;;  %vm4744_vm7 = vmpackc.low %vm5365_vm4, %vm5364_vm1  ;;  %vm5373_vm4 = vcmp.eq.s32.totalorder %v3963_v45, %v4198_v17  ;;  %2511 = vmatprep.mubr.msk.bf16.mxu1 %vm4642_vm2, %v3399_v49  ;;  %v5378_v45 = vmov 0  ;;  %vm5380_vm2 = vcmp.eq.s32.totalorder %v3967_v47, %v4096_v12 }
 0x18b   : > { %v5367_v5 = vsel %vm4744_vm7, 4294967295, %v5366_v5  ;;  %vm4757_vm14 = vmpackc.low %vm5369_vm8, %vm5368_vm11  ;;  %vm572_vm11 = vcmp.eq.s32.totalorder %v3967_v47, %v473_v44  ;;  %vm5377_vm8 = vcmp.eq.s32.totalorder %v3965_v46, %v4198_v17  ;;  %v958_v46 = vld [vmem:[#allocation2 + $0x30] sm:$0xff] }
 0x18c   : > { %v5371_v6 = vsel %vm4757_vm14, 4294967295, %v5370_v6  ;;  %vm4773_vm1 = vmpackc.low %vm5373_vm4, %vm5372_vm12  ;;  %vm570_vm12 = vcmp.eq.s32.totalorder %v3969_v48, %v472_v43  ;;  %vm574_vm4 = vcmp.eq.s32.totalorder %v3969_v48, %v473_v44 }
 0x18d   : > { %v5375_v7 = vsel %vm4773_vm1, 4294967295, %v5374_v7  ;;  %vm4788_vm14 = vmpackc.low %vm5377_vm8, %vm5376_vm13  ;;  %vm5381_vm1 = vcmp.eq.s32.totalorder %v3967_v47, %v4198_v17  ;;  %vm5384_vm13 = vcmp.eq.s32.totalorder %v3969_v48, %v4096_v12  ;;  %vm5385_vm8 = vcmp.eq.s32.totalorder %v3969_v48, %v4198_v17 }
 0x18e   : > { %v5379_v45 = vsel %vm4788_vm14, 4294967295, %v5378_v45  ;;  %vm4800_vm7 = vmpackc.low %vm5381_vm1, %vm5380_vm2  ;;  %vm5388_vm1 = vnez %v5255_v33  ;;  %vm5389_vm2 = vnez %v5259_v34  ;;  %v954_v34 = vld [vmem:[#allocation2 + $0x10] sm:$0xff] }
 0x18f   : > { %vm4810_vm14 = vmpackc.low %vm5385_vm8, %vm5384_vm13  ;;  %vm5390_vm13 = vnez %v5263_v35  ;;  %vm5397_vm8 = vnez %v5303_v52 }
 0x190   : > { %vm2448_vm10 = vmpackc.low %vm572_vm11, %vm568_vm15  ;;  %vm5391_vm15 = vnez %v5267_v36  ;;  %vm5394_vm11 = vnez %v5287_v50 }
 0x191   : > { %vm2512_vm3 = vmpackc.low %vm574_vm4, %vm570_vm12  ;;  %2449 = vmatmul.mubr.msk.bf16.gmra.mrb[32].mxu0 %vm2448_vm10, %v3399_v49  ;;  %vm5392_vm10 = vnez %v5273_v38  ;;  %vm5395_vm12 = vnez %v5292_v27  ;;  %vm5396_vm4 = vnez %v5298_v51 }
 0x192   : > { %2513 = vmatmul.mubr.msk.bf16.gmra.mrb[32].mxu1 %vm2512_vm3, %v3399_v49  ;;  %2451 = vmatprep.mubr.msk.bf16.mxu0 %vm5388_vm1, %v3399_v49  ;;  %vm5393_vm3 = vnez %v5281_v41  ;;  %vm5398_vm1 = vnez %v5307_v53 }
 0x193   : > { %2515 = vmatprep.mubr.msk.bf16.mxu1 %vm5389_vm2, %v3399_v49  ;;  %vm5399_vm2 = vnez %v5336_v62 }
 0x199   : > { %2453 = vmatmul.mubr.msk.bf16.gmra.mrb[36].mxu0 %vm5390_vm13, %v3399_v49  ;;  %vm5400_vm13 = vnez %v5342_v63 }
 0x19a   : > { %2517 = vmatmul.mubr.msk.bf16.gmra.mrb[36].mxu1 %vm5391_vm15, %v3399_v49  ;;  %2455 = vmatprep.mubr.msk.bf16.mxu0 %vm5392_vm10, %v3399_v49  ;;  %vm5405_vm15 = vnez %v5363_v4  ;;  %vm5406_vm10 = vnez %v5367_v5 }
 0x19b   : > { %2519 = vmatprep.mubr.msk.bf16.mxu1 %vm5393_vm3, %v3399_v49  ;;  %vm5407_vm3 = vnez %v5371_v6 }
 0x1a1   : > { %2457 = vmatmul.mubr.msk.bf16.gmra.mrb[40].mxu0 %vm5394_vm11, %v3399_v49  ;;  %vm5408_vm11 = vnez %v5375_v7 }
 0x1a2   : > { %2521 = vmatmul.mubr.msk.bf16.gmra.mrb[40].mxu1 %vm5395_vm12, %v3399_v49  ;;  %2459 = vmatprep.mubr.msk.bf16.mxu0 %vm5396_vm4, %v3399_v49  ;;  %vm5409_vm12 = vnez %v5379_v45 }
 0x1a3   : > { %2523 = vmatprep.mubr.msk.bf16.mxu1 %vm5397_vm8, %v3399_v49 }
 0x1a9   : > { %2461 = vmatmul.mubr.msk.bf16.gmra.mrb[44].mxu0 %vm5398_vm1, %v3399_v49 }
 0x1aa   : > { %2525 = vmatmul.mubr.msk.bf16.gmra.mrb[44].mxu1 %vm4606_vm9, %v3399_v49  ;;  %2463 = vmatprep.mubr.msk.bf16.mxu0 %vm4620_vm6, %v3399_v49  ;;  %vm5401_vm9 = vnez %v5347_v0  ;;  %vm5402_vm6 = vnez %v5351_v1 }
 0x1ab   : > { %2527 = vmatprep.mubr.msk.bf16.mxu1 %vm4638_vm0, %v3399_v49  ;;  %vm5403_vm0 = vnez %v5355_v2 }
 0x1b1   : > { %2465 = vmatmul.mubr.msk.bf16.gmra.mrb[48].mxu0 %vm4652_vm5, %v3399_v49  ;;  %vm5404_vm5 = vnez %v5359_v3 }
 0x1b2   : > { %2529 = vmatmul.mubr.msk.bf16.gmra.mrb[48].mxu1 %vm5399_vm2, %v3399_v49  ;;  %2467 = vmatprep.mubr.msk.bf16.mxu0 %vm5400_vm13, %v3399_v49 }
 0x1b3   : > { %2531 = vmatprep.mubr.msk.bf16.mxu1 %vm5401_vm9, %v3399_v49 }
 0x1b9   : > { %2469 = vmatmul.mubr.msk.bf16.gmra.mrb[52].mxu0 %vm5402_vm6, %v3399_v49 }
 0x1ba   : > { %2533 = vmatmul.mubr.msk.bf16.gmra.mrb[52].mxu1 %vm5403_vm0, %v3399_v49  ;;  %2471 = vmatprep.mubr.msk.bf16.mxu0 %vm5404_vm5, %v3399_v49 }
 0x1bb   : > { %2535 = vmatprep.mubr.msk.bf16.mxu1 %vm5405_vm15, %v3399_v49 }
 0x1c1   : > { %2473 = vmatmul.mubr.msk.bf16.gmra.mrb[56].mxu0 %vm5406_vm10, %v3399_v49 }
 0x1c2   : > { %2537 = vmatmul.mubr.msk.bf16.gmra.mrb[56].mxu1 %vm5407_vm3, %v3399_v49  ;;  %2475 = vmatprep.mubr.msk.bf16.mxu0 %vm5408_vm11, %v3399_v49 }
 0x1c3   : > { %2539 = vmatprep.mubr.msk.bf16.mxu1 %vm5409_vm12, %v3399_v49 }
 0x1c9   : > { %2477 = vmatmul.mubr.msk.bf16.gmra.mrb[60].mxu0 %vm4800_vm7, %v3399_v49 }
 0x1ca   : > { %2541 = vmatmul.mubr.msk.bf16.gmra.mrb[60].mxu1 %vm4810_vm14, %v3399_v49 }
 0x21f   : > { %v2577_v47 = vpop.f32.mrb[0].mxu0 }
 0x220   : > { %v2689_v48 = vpop.f32.mrb[0].mxu1  ;;  %v2578_v9 = vpop.f32.mrb[1].mxu0 }
 0x221   : > { %v2579_v10 = vadd.f32 %v2578_v9, %v2577_v47  ;;  %v2690_v11 = vpop.f32.mrb[1].mxu1  ;;  %v2580_v12 = vpop.f32.mrb[2].mxu0 }
 0x222   : > { %v2691_v13 = vadd.f32 %v2690_v11, %v2689_v48  ;;  %v2692_v14 = vpop.f32.mrb[2].mxu1  ;;  %v2581_v15 = vpop.f32.mrb[3].mxu0  ;;  %v959_v11 = vld [vmem:[#allocation2 + $0x38] sm:$0xff] }
 0x223   : > { %v2582_v17 = vadd.f32 %v2581_v15, %v2580_v12  ;;  %v2693_v18 = vpop.f32.mrb[3].mxu1 }
 0x224   : > { %v1436_v19 = vadd.f32 %v2691_v13, %v2579_v10  ;;  %v2694_v20 = vadd.f32 %v2693_v18, %v2692_v14 }
 0x226   : > { %v1562_v22 = vadd.f32 %v1436_v19, %v952_v16  ;;  %v1439_v23 = vadd.f32 %v2694_v20, %v2582_v17 }
 0x227   : > { %v2583_v24 = vpop.f32.mrb[4].mxu0 }
 0x228   : > { %1594 = vst [vmem:[#allocation2] sm:$0xff] %v1562_v22  ;;  %v1563_v49 = vadd.f32 %v1439_v23, %v953_v21  ;;  %v2695_v25 = vpop.f32.mrb[4].mxu1  ;;  %v2584_v26 = vpop.f32.mrb[5].mxu0 }
 0x229   : > { %v2585_v28 = vadd.f32 %v2584_v26, %v2583_v24  ;;  %v2696_v29 = vpop.f32.mrb[5].mxu1  ;;  %v2586_v30 = vpop.f32.mrb[6].mxu0  ;;  %v960_v24 = vld [vmem:[#allocation2 + $0x40] sm:$0xff] }
 0x22a   : > { %1595 = vst [vmem:[#allocation2 + $0x8] sm:$0xff] %v1563_v49  ;;  %v2697_v31 = vadd.f32 %v2696_v29, %v2695_v25  ;;  %v2698_v32 = vpop.f32.mrb[6].mxu1  ;;  %v2587_v33 = vpop.f32.mrb[7].mxu0  ;;  %v961_v29 = vld [vmem:[#allocation2 + $0x48] sm:$0xff] }
 0x22b   : > { %v2588_v35 = vadd.f32 %v2587_v33, %v2586_v30  ;;  %v2699_v36 = vpop.f32.mrb[7].mxu1 }
 0x22c   : > { %v1444_v37 = vadd.f32 %v2697_v31, %v2585_v28  ;;  %v2700_v38 = vadd.f32 %v2699_v36, %v2698_v32 }
 0x22e   : > { %v1564_v40 = vadd.f32 %v1444_v37, %v954_v34  ;;  %v1447_v41 = vadd.f32 %v2700_v38, %v2588_v35 }
 0x22f   : > { %v2589_v42 = vpop.f32.mrb[8].mxu0 }
 0x230   : > { %1596 = vst [vmem:[#allocation2 + $0x10] sm:$0xff] %v1564_v40  ;;  %v1565_v43 = vadd.f32 %v1447_v41, %v955_v39  ;;  %v2701_v44 = vpop.f32.mrb[8].mxu1  ;;  %v2590_v50 = vpop.f32.mrb[9].mxu0 }
 0x231   : > { %v2591_v27 = vadd.f32 %v2590_v50, %v2589_v42  ;;  %v2702_v51 = vpop.f32.mrb[9].mxu1  ;;  %v2592_v52 = vpop.f32.mrb[10].mxu0  ;;  %v962_v42 = vld [vmem:[#allocation2 + $0x50] sm:$0xff] }
 0x232   : > { %1597 = vst [vmem:[#allocation2 + $0x18] sm:$0xff] %v1565_v43  ;;  %v2703_v53 = vadd.f32 %v2702_v51, %v2701_v44  ;;  %v2704_v54 = vpop.f32.mrb[10].mxu1  ;;  %v2593_v55 = vpop.f32.mrb[11].mxu0  ;;  %v963_v51 = vld [vmem:[#allocation2 + $0x58] sm:$0xff] }
 0x233   : > { %v2594_v57 = vadd.f32 %v2593_v55, %v2592_v52  ;;  %v2705_v58 = vpop.f32.mrb[11].mxu1 }
 0x234   : > { %v1452_v59 = vadd.f32 %v2703_v53, %v2591_v27  ;;  %v2706_v60 = vadd.f32 %v2705_v58, %v2704_v54 }
 0x236   : > { %v1566_v62 = vadd.f32 %v1452_v59, %v956_v56  ;;  %v1455_v63 = vadd.f32 %v2706_v60, %v2594_v57 }
 0x237   : > { %v2595_v0 = vpop.f32.mrb[12].mxu0 }
 0x238   : > { %1598 = vst [vmem:[#allocation2 + $0x20] sm:$0xff] %v1566_v62  ;;  %v1567_v1 = vadd.f32 %v1455_v63, %v957_v61  ;;  %v2707_v2 = vpop.f32.mrb[12].mxu1  ;;  %v2596_v3 = vpop.f32.mrb[13].mxu0 }
 0x239   : > { %v2597_v4 = vadd.f32 %v2596_v3, %v2595_v0  ;;  %v2708_v5 = vpop.f32.mrb[13].mxu1  ;;  %v2598_v6 = vpop.f32.mrb[14].mxu0  ;;  %v964_v0 = vld [vmem:[#allocation2 + $0x60] sm:$0xff] }
 0x23a   : > { %1599 = vst [vmem:[#allocation2 + $0x28] sm:$0xff] %v1567_v1  ;;  %v2709_v7 = vadd.f32 %v2708_v5, %v2707_v2  ;;  %v2710_v45 = vpop.f32.mrb[14].mxu1  ;;  %v2599_v8 = vpop.f32.mrb[15].mxu0  ;;  %v965_v5 = vld [vmem:[#allocation2 + $0x68] sm:$0xff] }
 0x23b   : > { %v2600_v47 = vadd.f32 %v2599_v8, %v2598_v6  ;;  %v2711_v48 = vpop.f32.mrb[15].mxu1 }
 0x23c   : > { %v1460_v9 = vadd.f32 %v2709_v7, %v2597_v4  ;;  %v2712_v10 = vadd.f32 %v2711_v48, %v2710_v45 }
 0x23e   : > { %v1568_v12 = vadd.f32 %v1460_v9, %v958_v46  ;;  %v1463_v13 = vadd.f32 %v2712_v10, %v2600_v47 }
 0x23f   : > { %v2601_v14 = vpop.f32.mrb[16].mxu0 }
 0x240   : > { %1600 = vst [vmem:[#allocation2 + $0x30] sm:$0xff] %v1568_v12  ;;  %v1569_v15 = vadd.f32 %v1463_v13, %v959_v11  ;;  %v2713_v16 = vpop.f32.mrb[16].mxu1  ;;  %v2602_v17 = vpop.f32.mrb[17].mxu0 }
 0x241   : > { %v2603_v18 = vadd.f32 %v2602_v17, %v2601_v14  ;;  %v2714_v19 = vpop.f32.mrb[17].mxu1  ;;  %v2604_v20 = vpop.f32.mrb[18].mxu0  ;;  %v966_v14 = vld [vmem:[#allocation2 + $0x70] sm:$0xff] }
 0x242   : > { %1601 = vst [vmem:[#allocation2 + $0x38] sm:$0xff] %v1569_v15  ;;  %v2715_v21 = vadd.f32 %v2714_v19, %v2713_v16  ;;  %v2716_v22 = vpop.f32.mrb[18].mxu1  ;;  %v2605_v23 = vpop.f32.mrb[19].mxu0  ;;  %v967_v19 = vld [vmem:[#allocation2 + $0x78] sm:$0xff] }
 0x243   : > { %v2606_v49 = vadd.f32 %v2605_v23, %v2604_v20  ;;  %v2717_v25 = vpop.f32.mrb[19].mxu1 }
 0x244   : > { %v1468_v26 = vadd.f32 %v2715_v21, %v2603_v18  ;;  %v2718_v28 = vadd.f32 %v2717_v25, %v2716_v22 }
 0x246   : > { %v1570_v30 = vadd.f32 %v1468_v26, %v960_v24  ;;  %v1471_v31 = vadd.f32 %v2718_v28, %v2606_v49 }
 0x248   : > { %1602 = vst [vmem:[#allocation2 + $0x40] sm:$0xff] %v1570_v30  ;;  %v1571_v33 = vadd.f32 %v1471_v31, %v961_v29  ;;  %v2719_v34 = vpop.f32.mrb[20].mxu1 }
 0x249   : > { %v2607_v32 = vpop.f32.mrb[20].mxu0  ;;  %v2720_v37 = vpop.f32.mrb[21].mxu1 }
 0x24a   : > { %v2608_v35 = vpop.f32.mrb[21].mxu0  ;;  %1603 = vst [vmem:[#allocation2 + $0x48] sm:$0xff] %v1571_v33  ;;  %v2721_v39 = vadd.f32 %v2720_v37, %v2719_v34  ;;  %v2722_v40 = vpop.f32.mrb[22].mxu1  ;;  %v969_v37 = vld [vmem:[#allocation2 + $0x88] sm:$0xff] }
 0x24b   : > { %v2609_v36 = vadd.f32 %v2608_v35, %v2607_v32  ;;  %v2610_v38 = vpop.f32.mrb[22].mxu0  ;;  %v2723_v44 = vpop.f32.mrb[23].mxu1  ;;  %v968_v32 = vld [vmem:[#allocation2 + $0x80] sm:$0xff] }
 0x24c   : > { %v2611_v41 = vpop.f32.mrb[23].mxu0  ;;  %v2724_v27 = vadd.f32 %v2723_v44, %v2722_v40 }
 0x24d   : > { %v2612_v43 = vadd.f32 %v2611_v41, %v2610_v38  ;;  %v1476_v50 = vadd.f32 %v2721_v39, %v2609_v36 }
 0x24f   : > { %v1572_v52 = vadd.f32 %v1476_v50, %v962_v42  ;;  %v1479_v53 = vadd.f32 %v2724_v27, %v2612_v43 }
 0x251   : > { %1604 = vst [vmem:[#allocation2 + $0x50] sm:$0xff] %v1572_v52  ;;  %v1573_v55 = vadd.f32 %v1479_v53, %v963_v51 }
 0x253   : > { %v2613_v54 = vpop.f32.mrb[24].mxu0  ;;  %1605 = vst [vmem:[#allocation2 + $0x58] sm:$0xff] %v1573_v55 }
 0x254   : > { %v2725_v56 = vpop.f32.mrb[24].mxu1  ;;  %v2614_v57 = vpop.f32.mrb[25].mxu0 }
 0x255   : > { %v2615_v58 = vadd.f32 %v2614_v57, %v2613_v54  ;;  %v2726_v59 = vpop.f32.mrb[25].mxu1  ;;  %v2616_v60 = vpop.f32.mrb[26].mxu0  ;;  %v970_v54 = vld [vmem:[#allocation2 + $0x90] sm:$0xff] }
 0x256   : > { %v2727_v61 = vadd.f32 %v2726_v59, %v2725_v56  ;;  %v2728_v62 = vpop.f32.mrb[26].mxu1  ;;  %v2617_v63 = vpop.f32.mrb[27].mxu0  ;;  %v971_v59 = vld [vmem:[#allocation2 + $0x98] sm:$0xff] }
 0x257   : > { %v2618_v1 = vadd.f32 %v2617_v63, %v2616_v60  ;;  %v2729_v2 = vpop.f32.mrb[27].mxu1 }
 0x258   : > { %v1484_v3 = vadd.f32 %v2727_v61, %v2615_v58  ;;  %v2730_v4 = vadd.f32 %v2729_v2, %v2728_v62 }
 0x25a   : > { %v1574_v6 = vadd.f32 %v1484_v3, %v964_v0  ;;  %v1487_v7 = vadd.f32 %v2730_v4, %v2618_v1 }
 0x25b   : > { %v2619_v45 = vpop.f32.mrb[28].mxu0 }
 0x25c   : > { %1606 = vst [vmem:[#allocation2 + $0x60] sm:$0xff] %v1574_v6  ;;  %v1575_v8 = vadd.f32 %v1487_v7, %v965_v5  ;;  %v2731_v46 = vpop.f32.mrb[28].mxu1  ;;  %v2620_v47 = vpop.f32.mrb[29].mxu0 }
 0x25d   : > { %v2621_v48 = vadd.f32 %v2620_v47, %v2619_v45  ;;  %v2732_v9 = vpop.f32.mrb[29].mxu1  ;;  %v2622_v10 = vpop.f32.mrb[30].mxu0  ;;  %v972_v45 = vld [vmem:[#allocation2 + $0xa0] sm:$0xff] }
 0x25e   : > { %1607 = vst [vmem:[#allocation2 + $0x68] sm:$0xff] %v1575_v8  ;;  %v2733_v11 = vadd.f32 %v2732_v9, %v2731_v46  ;;  %v2734_v12 = vpop.f32.mrb[30].mxu1  ;;  %v2623_v13 = vpop.f32.mrb[31].mxu0  ;;  %v973_v9 = vld [vmem:[#allocation2 + $0xa8] sm:$0xff] }
 0x25f   : > { %v2624_v15 = vadd.f32 %v2623_v13, %v2622_v10  ;;  %v2735_v16 = vpop.f32.mrb[31].mxu1 }
 0x260   : > { %v1492_v17 = vadd.f32 %v2733_v11, %v2621_v48  ;;  %v2736_v18 = vadd.f32 %v2735_v16, %v2734_v12 }
 0x262   : > { %v1576_v20 = vadd.f32 %v1492_v17, %v966_v14  ;;  %v1495_v21 = vadd.f32 %v2736_v18, %v2624_v15 }
 0x264   : > { %v2625_v22 = vpop.f32.mrb[32].mxu0  ;;  %1608 = vst [vmem:[#allocation2 + $0x70] sm:$0xff] %v1576_v20  ;;  %v1577_v23 = vadd.f32 %v1495_v21, %v967_v19 }
 0x265   : > { %v2737_v24 = vpop.f32.mrb[32].mxu1  ;;  %v2626_v49 = vpop.f32.mrb[33].mxu0 }
 0x266   : > { %v2627_v25 = vadd.f32 %v2626_v49, %v2625_v22  ;;  %v2738_v26 = vpop.f32.mrb[33].mxu1  ;;  %v2628_v28 = vpop.f32.mrb[34].mxu0  ;;  %1609 = vst [vmem:[#allocation2 + $0x78] sm:$0xff] %v1577_v23  ;;  %v974_v22 = vld [vmem:[#allocation2 + $0xb0] sm:$0xff] }
 0x267   : > { %v2739_v29 = vadd.f32 %v2738_v26, %v2737_v24  ;;  %v2740_v30 = vpop.f32.mrb[34].mxu1  ;;  %v2629_v31 = vpop.f32.mrb[35].mxu0  ;;  %v975_v26 = vld [vmem:[#allocation2 + $0xb8] sm:$0xff] }
 0x268   : > { %v2630_v33 = vadd.f32 %v2629_v31, %v2628_v28  ;;  %v2741_v34 = vpop.f32.mrb[35].mxu1 }
 0x269   : > { %v1500_v35 = vadd.f32 %v2739_v29, %v2627_v25  ;;  %v2742_v36 = vadd.f32 %v2741_v34, %v2740_v30 }
 0x26b   : > { %v1578_v38 = vadd.f32 %v1500_v35, %v968_v32  ;;  %v1503_v39 = vadd.f32 %v2742_v36, %v2630_v33 }
 0x26c   : > { %v2631_v40 = vpop.f32.mrb[36].mxu0 }
 0x26d   : > { %1610 = vst [vmem:[#allocation2 + $0x80] sm:$0xff] %v1578_v38  ;;  %v1579_v41 = vadd.f32 %v1503_v39, %v969_v37  ;;  %v2743_v42 = vpop.f32.mrb[36].mxu1  ;;  %v2632_v43 = vpop.f32.mrb[37].mxu0 }
 0x26e   : > { %v2633_v44 = vadd.f32 %v2632_v43, %v2631_v40  ;;  %v2744_v50 = vpop.f32.mrb[37].mxu1  ;;  %v2634_v27 = vpop.f32.mrb[38].mxu0  ;;  %v976_v40 = vld [vmem:[#allocation2 + $0xc0] sm:$0xff] }
 0x26f   : > { %1611 = vst [vmem:[#allocation2 + $0x88] sm:$0xff] %v1579_v41  ;;  %v2745_v51 = vadd.f32 %v2744_v50, %v2743_v42  ;;  %v2746_v52 = vpop.f32.mrb[38].mxu1  ;;  %v2635_v53 = vpop.f32.mrb[39].mxu0  ;;  %v977_v50 = vld [vmem:[#allocation2 + $0xc8] sm:$0xff] }
 0x270   : > { %v2636_v55 = vadd.f32 %v2635_v53, %v2634_v27  ;;  %v2747_v56 = vpop.f32.mrb[39].mxu1 }
 0x271   : > { %v1508_v57 = vadd.f32 %v2745_v51, %v2633_v44  ;;  %v2748_v58 = vadd.f32 %v2747_v56, %v2746_v52 }
 0x273   : > { %v1580_v60 = vadd.f32 %v1508_v57, %v970_v54  ;;  %v1511_v61 = vadd.f32 %v2748_v58, %v2636_v55 }
 0x274   : > { %v2637_v62 = vpop.f32.mrb[40].mxu0 }
 0x275   : > { %1612 = vst [vmem:[#allocation2 + $0x90] sm:$0xff] %v1580_v60  ;;  %v1581_v63 = vadd.f32 %v1511_v61, %v971_v59  ;;  %v2749_v0 = vpop.f32.mrb[40].mxu1  ;;  %v2638_v1 = vpop.f32.mrb[41].mxu0 }
 0x276   : > { %v2639_v2 = vadd.f32 %v2638_v1, %v2637_v62  ;;  %v2750_v3 = vpop.f32.mrb[41].mxu1  ;;  %v2640_v4 = vpop.f32.mrb[42].mxu0  ;;  %v978_v62 = vld [vmem:[#allocation2 + $0xd0] sm:$0xff] }
 0x277   : > { %1613 = vst [vmem:[#allocation2 + $0x98] sm:$0xff] %v1581_v63  ;;  %v2751_v5 = vadd.f32 %v2750_v3, %v2749_v0  ;;  %v2752_v6 = vpop.f32.mrb[42].mxu1  ;;  %v2641_v7 = vpop.f32.mrb[43].mxu0  ;;  %v979_v3 = vld [vmem:[#allocation2 + $0xd8] sm:$0xff] }
 0x278   : > { %v2642_v8 = vadd.f32 %v2641_v7, %v2640_v4  ;;  %v2753_v46 = vpop.f32.mrb[43].mxu1 }
 0x279   : > { %v1516_v47 = vadd.f32 %v2751_v5, %v2639_v2  ;;  %v2754_v48 = vadd.f32 %v2753_v46, %v2752_v6 }
 0x27b   : > { %v1582_v10 = vadd.f32 %v1516_v47, %v972_v45  ;;  %v1519_v11 = vadd.f32 %v2754_v48, %v2642_v8 }
 0x27c   : > { %v2643_v12 = vpop.f32.mrb[44].mxu0 }
 0x27d   : > { %1614 = vst [vmem:[#allocation2 + $0xa0] sm:$0xff] %v1582_v10  ;;  %v1583_v13 = vadd.f32 %v1519_v11, %v973_v9  ;;  %v2755_v14 = vpop.f32.mrb[44].mxu1  ;;  %v2644_v15 = vpop.f32.mrb[45].mxu0 }
 0x27e   : > { %v2645_v16 = vadd.f32 %v2644_v15, %v2643_v12  ;;  %v2756_v17 = vpop.f32.mrb[45].mxu1  ;;  %v2646_v18 = vpop.f32.mrb[46].mxu0  ;;  %v980_v12 = vld [vmem:[#allocation2 + $0xe0] sm:$0xff] }
 0x27f   : > { %1615 = vst [vmem:[#allocation2 + $0xa8] sm:$0xff] %v1583_v13  ;;  %v2757_v19 = vadd.f32 %v2756_v17, %v2755_v14  ;;  %v2758_v20 = vpop.f32.mrb[46].mxu1  ;;  %v2647_v21 = vpop.f32.mrb[47].mxu0  ;;  %v981_v17 = vld [vmem:[#allocation2 + $0xe8] sm:$0xff] }
 0x280   : > { %v2648_v23 = vadd.f32 %v2647_v21, %v2646_v18  ;;  %v2759_v24 = vpop.f32.mrb[47].mxu1 }
 0x281   : > { %v1524_v49 = vadd.f32 %v2757_v19, %v2645_v16  ;;  %v2760_v25 = vadd.f32 %v2759_v24, %v2758_v20 }
 0x283   : > { %v1584_v28 = vadd.f32 %v1524_v49, %v974_v22  ;;  %v1527_v29 = vadd.f32 %v2760_v25, %v2648_v23 }
 0x284   : > { %v2649_v30 = vpop.f32.mrb[48].mxu0 }
 0x285   : > { %1616 = vst [vmem:[#allocation2 + $0xb0] sm:$0xff] %v1584_v28  ;;  %v1585_v31 = vadd.f32 %v1527_v29, %v975_v26  ;;  %v2761_v32 = vpop.f32.mrb[48].mxu1  ;;  %v2650_v33 = vpop.f32.mrb[49].mxu0 }
 0x286   : > { %v2651_v34 = vadd.f32 %v2650_v33, %v2649_v30  ;;  %v2762_v35 = vpop.f32.mrb[49].mxu1  ;;  %v2652_v36 = vpop.f32.mrb[50].mxu0  ;;  %v982_v30 = vld [vmem:[#allocation2 + $0xf0] sm:$0xff] }
 0x287   : > { %1617 = vst [vmem:[#allocation2 + $0xb8] sm:$0xff] %v1585_v31  ;;  %v2763_v37 = vadd.f32 %v2762_v35, %v2761_v32  ;;  %v2764_v38 = vpop.f32.mrb[50].mxu1  ;;  %v2653_v39 = vpop.f32.mrb[51].mxu0  ;;  %v983_v35 = vld [vmem:[#allocation2 + $0xf8] sm:$0xff] }
 0x288   : > { %v2654_v41 = vadd.f32 %v2653_v39, %v2652_v36  ;;  %v2765_v42 = vpop.f32.mrb[51].mxu1 }
 0x289   : > { %v1532_v43 = vadd.f32 %v2763_v37, %v2651_v34  ;;  %v2766_v44 = vadd.f32 %v2765_v42, %v2764_v38 }
 0x28b   : > { %v1586_v27 = vadd.f32 %v1532_v43, %v976_v40  ;;  %v1535_v51 = vadd.f32 %v2766_v44, %v2654_v41 }
 0x28c   : > { %v2655_v52 = vpop.f32.mrb[52].mxu0 }
 0x28d   : > { %1618 = vst [vmem:[#allocation2 + $0xc0] sm:$0xff] %v1586_v27  ;;  %v1587_v53 = vadd.f32 %v1535_v51, %v977_v50  ;;  %v2767_v54 = vpop.f32.mrb[52].mxu1  ;;  %v2656_v55 = vpop.f32.mrb[53].mxu0 }
 0x28e   : > { %v2657_v56 = vadd.f32 %v2656_v55, %v2655_v52  ;;  %v2768_v57 = vpop.f32.mrb[53].mxu1  ;;  %v2658_v58 = vpop.f32.mrb[54].mxu0 }
 0x28f   : > { %1619 = vst [vmem:[#allocation2 + $0xc8] sm:$0xff] %v1587_v53  ;;  %v2769_v59 = vadd.f32 %v2768_v57, %v2767_v54  ;;  %v2770_v60 = vpop.f32.mrb[54].mxu1  ;;  %v2659_v61 = vpop.f32.mrb[55].mxu0 }
 0x290   : > { %v2660_v63 = vadd.f32 %v2659_v61, %v2658_v58  ;;  %v2771_v0 = vpop.f32.mrb[55].mxu1 }
 0x291   : > { %v1540_v1 = vadd.f32 %v2769_v59, %v2657_v56  ;;  %v2772_v2 = vadd.f32 %v2771_v0, %v2770_v60 }
 0x293   : > { %v1588_v4 = vadd.f32 %v1540_v1, %v978_v62  ;;  %v1543_v5 = vadd.f32 %v2772_v2, %v2660_v63 }
 0x294   : > { %v2661_v6 = vpop.f32.mrb[56].mxu0 }
 0x295   : > { %1620 = vst [vmem:[#allocation2 + $0xd0] sm:$0xff] %v1588_v4  ;;  %v1589_v7 = vadd.f32 %v1543_v5, %v979_v3  ;;  %v2773_v45 = vpop.f32.mrb[56].mxu1  ;;  %v2662_v8 = vpop.f32.mrb[57].mxu0 }
 0x296   : > { %v2663_v46 = vadd.f32 %v2662_v8, %v2661_v6  ;;  %v2774_v47 = vpop.f32.mrb[57].mxu1  ;;  %v2664_v48 = vpop.f32.mrb[58].mxu0 }
 0x297   : > { %1621 = vst [vmem:[#allocation2 + $0xd8] sm:$0xff] %v1589_v7  ;;  %v2775_v9 = vadd.f32 %v2774_v47, %v2773_v45  ;;  %v2776_v10 = vpop.f32.mrb[58].mxu1  ;;  %v2665_v11 = vpop.f32.mrb[59].mxu0 }
 0x298   : > { %v2666_v13 = vadd.f32 %v2665_v11, %v2664_v48  ;;  %v2777_v14 = vpop.f32.mrb[59].mxu1 }
 0x299   : > { %v1548_v15 = vadd.f32 %v2775_v9, %v2663_v46  ;;  %v2778_v16 = vadd.f32 %v2777_v14, %v2776_v10 }
 0x29b   : > { %v1590_v18 = vadd.f32 %v1548_v15, %v980_v12  ;;  %v1551_v19 = vadd.f32 %v2778_v16, %v2666_v13 }
 0x29c   : > { %v2667_v20 = vpop.f32.mrb[60].mxu0 }
 0x29d   : > { %1622 = vst [vmem:[#allocation2 + $0xe0] sm:$0xff] %v1590_v18  ;;  %v1591_v21 = vadd.f32 %v1551_v19, %v981_v17  ;;  %v2779_v22 = vpop.f32.mrb[60].mxu1  ;;  %v2668_v23 = vpop.f32.mrb[61].mxu0 }
 0x29e   : > { %v2669_v24 = vadd.f32 %v2668_v23, %v2667_v20  ;;  %v2780_v49 = vpop.f32.mrb[61].mxu1  ;;  %v2670_v25 = vpop.f32.mrb[62].mxu0 }
 0x29f   : > { %1623 = vst [vmem:[#allocation2 + $0xe8] sm:$0xff] %v1591_v21  ;;  %v2781_v26 = vadd.f32 %v2780_v49, %v2779_v22  ;;  %v2782_v28 = vpop.f32.mrb[62].mxu1  ;;  %v2671_v29 = vpop.f32.mrb[63].mxu0 }
 0x2a0   : > { %v2672_v31 = vadd.f32 %v2671_v29, %v2670_v25  ;;  %v2783_v32 = vpop.f32.mrb[63].mxu1 }
 0x2a1   : > { %v1556_v33 = vadd.f32 %v2781_v26, %v2669_v24  ;;  %v2784_v34 = vadd.f32 %v2783_v32, %v2782_v28 }
 0x2a3   : > { %v1592_v36 = vadd.f32 %v1556_v33, %v982_v30  ;;  %v1559_v37 = vadd.f32 %v2784_v34, %v2672_v31 }
 0x2a5   : > { %1624 = vst [vmem:[#allocation2 + $0xf0] sm:$0xff] %v1592_v36  ;;  %v1593_v38 = vadd.f32 %v1559_v37, %v983_v35 }
 0x2a7   : > { %1625 = vst [vmem:[#allocation2 + $0xf8] sm:$0xff] %v1593_v38 }
 0x2a8 PF: > { %s5410_s29 = sld [smem:[#allocation32_spill]] }
 0x2ae   : > { %p2542_p0 = scmp.ne.s32.totalorder %s5410_s29, 1 }
 0x2af   : > { %v3078_v39 = vld [vmem:[#allocation11] sm:$0xff] (!%p2542_p0)   ;;  %v3079_v40 = vld [vmem:[#allocation11 + $0x8] sm:$0xff] (!%p2542_p0)   ;;  %v3080_v41 = vld [vmem:[#allocation11 + $0x10] sm:$0xff] (!%p2542_p0)   ;;  %s5411_s28 = sld [smem:[#allocation42_spill]] (!%p2542_p0) }
 0x2b0   : > { %1629 = sbr.rel (%p2542_p0) target bundleno = 971 (0x3cb), region = 68  ;;  %2809 = vmatprep.subr.bf16.mxu0 (!%p2542_p0), %v3078_v39  ;;  %2857 = vmatprep.subr.bf16.mxu1 (!%p2542_p0), %v3078_v39  ;;  %v3081_v42 = vld [vmem:[#allocation11 + $0x18] sm:$0xff] (!%p2542_p0)   ;;  %v1631_v44 = vld [vmem:[#allocation2 + $0x8] sm:$0xff] (!%p2542_p0)  ;;  %v3083_v54 = vld [vmem:[#allocation11 + $0x28] sm:$0xff] (!%p2542_p0)  }
 0x2b1   : > { %2810 = vmatpush3.bf16.msra.mxu0 (!%p2542_p0), %v3078_v39  ;;  %2865 = vmatpush3.bf16.msra.mxu1 (!%p2542_p0), %v3078_v39  ;;  %v1630_v43 = vld [vmem:[#allocation2] sm:$0xff] (!%p2542_p0)  ;;  %v1647_v51 = vld [vmem:[#allocation2 + $0x88] sm:$0xff] (!%p2542_p0)  ;;  %v3084_v55 = vld [vmem:[#allocation11 + $0x30] sm:$0xff] (!%p2542_p0)  }
 0x2b2   : > { %2811 = vmatprep.subr.bf16.mxu0 (!%p2542_p0), %v3079_v40  ;;  %2858 = vmatprep.subr.bf16.mxu1 (!%p2542_p0), %v3079_v40  ;;  %v1646_v50 = vld [vmem:[#allocation2 + $0x80] sm:$0xff] (!%p2542_p0)  ;;  %v1662_v27 = vpack.c.bf16 (!%p2542_p0), %v1631_v44, %v1630_v43  ;;  %v3082_v53 = vld [vmem:[#allocation11 + $0x20] sm:$0xff] (!%p2542_p0)   ;;  %v1632_v57 = vld [vmem:[#allocation2 + $0x10] sm:$0xff] (!%p2542_p0) }
 0x2b3   : > { %v1670_v52 = vpack.c.bf16 (!%p2542_p0), %v1647_v51, %v1646_v50  ;;  %v3085_v56 = vld [vmem:[#allocation11 + $0x38] sm:$0xff] (!%p2542_p0)   ;;  %v1633_v58 = vld [vmem:[#allocation2 + $0x18] sm:$0xff] (!%p2542_p0)  ;;  %v1648_v59 = vld [vmem:[#allocation2 + $0x90] sm:$0xff] (!%p2542_p0) }
 0x2b4   : > { %2825 = vmatprep.mubr.bf16.mxu0 (!%p2542_p0), %v1662_v27  ;;  %v1649_v60 = vld [vmem:[#allocation2 + $0x98] sm:$0xff] (!%p2542_p0)  ;;  %v1634_v61 = vld [vmem:[#allocation2 + $0x20] sm:$0xff] (!%p2542_p0)  ;;  %v1635_v62 = vld [vmem:[#allocation2 + $0x28] sm:$0xff] (!%p2542_p0)  ;;  %v1663_v1 = vpack.c.bf16 (!%p2542_p0), %v1633_v58, %v1632_v57 }
 0x2b5   : > { %2812 = vmatpush3.bf16.msra.mxu0 (!%p2542_p0), %v3079_v40  ;;  %2866 = vmatpush3.bf16.msra.mxu1 (!%p2542_p0), %v3079_v40  ;;  %v1650_v63 = vld [vmem:[#allocation2 + $0xa0] sm:$0xff] (!%p2542_p0)  ;;  %v1651_v0 = vld [vmem:[#allocation2 + $0xa8] sm:$0xff] (!%p2542_p0)  ;;  %v1671_v2 = vpack.c.bf16 (!%p2542_p0), %v1649_v60, %v1648_v59  ;;  %v1664_v3 = vpack.c.bf16 (!%p2542_p0), %v1635_v62, %v1634_v61  ;;  %v1636_v5 = vld [vmem:[#allocation2 + $0x30] sm:$0xff] (!%p2542_p0) }
 0x2b6   : > { %2813 = vmatprep.subr.bf16.mxu0 (!%p2542_p0), %v3080_v41  ;;  %2859 = vmatprep.subr.bf16.mxu1 (!%p2542_p0), %v3080_v41  ;;  %v1672_v4 = vpack.c.bf16 (!%p2542_p0), %v1651_v0, %v1650_v63  ;;  %v1637_v6 = vld [vmem:[#allocation2 + $0x38] sm:$0xff] (!%p2542_p0)  ;;  %v1652_v7 = vld [vmem:[#allocation2 + $0xb0] sm:$0xff] (!%p2542_p0)  ;;  %v1638_v8 = vld [vmem:[#allocation2 + $0x40] sm:$0xff] (!%p2542_p0) }
 0x2b7   : > { %2841 = vmatprep.mubr.bf16.mxu1 %v1670_v52  ;;  %v1653_v45 = vld [vmem:[#allocation2 + $0xb8] sm:$0xff]  ;;  %v1639_v46 = vld [vmem:[#allocation2 + $0x48] sm:$0xff]  ;;  %v1654_v47 = vld [vmem:[#allocation2 + $0xc0] sm:$0xff]  ;;  %v1665_v9 = vpack.c.bf16 %v1637_v6, %v1636_v5 }
 0x2b8   : > { %v1655_v48 = vld [vmem:[#allocation2 + $0xc8] sm:$0xff]  ;;  %v1673_v10 = vpack.c.bf16 %v1653_v45, %v1652_v7  ;;  %v1666_v11 = vpack.c.bf16 %v1639_v46, %v1638_v8  ;;  %v1640_v13 = vld [vmem:[#allocation2 + $0x50] sm:$0xff]  ;;  %v1641_v14 = vld [vmem:[#allocation2 + $0x58] sm:$0xff] }
 0x2b9   : > { %2814 = vmatpush3.bf16.msra.mxu0 %v3080_v41  ;;  %2867 = vmatpush3.bf16.msra.mxu1 %v3080_v41  ;;  %v1674_v12 = vpack.c.bf16 %v1655_v48, %v1654_v47  ;;  %v1656_v15 = vld [vmem:[#allocation2 + $0xd0] sm:$0xff]  ;;  %v1657_v16 = vld [vmem:[#allocation2 + $0xd8] sm:$0xff]  ;;  %v1642_v17 = vld [vmem:[#allocation2 + $0x60] sm:$0xff]  ;;  %v1667_v21 = vpack.c.bf16 %v1641_v14, %v1640_v13 }
 0x2ba   : > { %2815 = vmatprep.subr.bf16.mxu0 %v3081_v42  ;;  %2860 = vmatprep.subr.bf16.mxu1 %v3081_v42  ;;  %v1643_v18 = vld [vmem:[#allocation2 + $0x68] sm:$0xff]  ;;  %v1658_v19 = vld [vmem:[#allocation2 + $0xe0] sm:$0xff]  ;;  %v1675_v22 = vpack.c.bf16 %v1657_v16, %v1656_v15  ;;  %v1644_v49 = vld [vmem:[#allocation2 + $0x70] sm:$0xff] }
 0x2bb   : > { %v1659_v20 = vld [vmem:[#allocation2 + $0xe8] sm:$0xff]  ;;  %v1668_v23 = vpack.c.bf16 %v1643_v18, %v1642_v17  ;;  %v1645_v25 = vld [vmem:[#allocation2 + $0x78] sm:$0xff]  ;;  %v1660_v26 = vld [vmem:[#allocation2 + $0xf0] sm:$0xff] }
 0x2bc   : > { %v1676_v24 = vpack.c.bf16 %v1659_v20, %v1658_v19  ;;  %v1661_v28 = vld [vmem:[#allocation2 + $0xf8] sm:$0xff]  ;;  %v1669_v29 = vpack.c.bf16 %v1645_v25, %v1644_v49  ;;  %v4904_v31 = vld [vmem:[%s5411_s28] ss:$0 sm:$0xff]  ;;  %v1910_v39 = vld [vmem:[%s3906_s17] sm:$0xff] }
 0x2bd   : > { %2816 = vmatpush3.bf16.msra.mxu0 %v3081_v42  ;;  %2868 = vmatpush3.bf16.msra.mxu1 %v3081_v42  ;;  %v1677_v30 = vpack.c.bf16 %v1661_v28, %v1660_v26  ;;  %v1912_v33 = vld [vmem:[%s3906_s17 + $0x10] sm:$0xff]  ;;  %v1926_v41 = vld [vmem:[%s3906_s17 + $0x80] sm:$0xff]  ;;  %v1913_v50 = vld [vmem:[%s3906_s17 + $0x18] sm:$0xff] }
 0x2be   : > { %2817 = vmatprep.subr.bf16.mxu0 %v3082_v53  ;;  %2861 = vmatprep.subr.bf16.mxu1 %v3082_v53  ;;  %v1928_v35 = vld [vmem:[%s3906_s17 + $0x90] sm:$0xff]  ;;  %v1929_v51 = vld [vmem:[%s3906_s17 + $0x98] sm:$0xff]  ;;  %v1911_v57 = vld [vmem:[%s3906_s17 + $0x8] sm:$0xff] }
 0x2bf   : > { %v1927_v59 = vld [vmem:[%s3906_s17 + $0x88] sm:$0xff]  ;;  %v1916_v48 = vld [vmem:[%s3906_s17 + $0x30] sm:$0xff] }
 0x2c1   : > { %2818 = vmatpush3.bf16.msra.mxu0 %v3082_v53  ;;  %2869 = vmatpush3.bf16.msra.mxu1 %v3082_v53 }
 0x2c2   : > { %2819 = vmatprep.subr.bf16.mxu0 %v3083_v54  ;;  %2862 = vmatprep.subr.bf16.mxu1 %v3083_v54 }
 0x2c5   : > { %2820 = vmatpush3.bf16.msra.mxu0 %v3083_v54  ;;  %2870 = vmatpush3.bf16.msra.mxu1 %v3083_v54 }
 0x2c6   : > { %2821 = vmatprep.subr.bf16.mxu0 %v3084_v55  ;;  %2863 = vmatprep.subr.bf16.mxu1 %v3084_v55 }
 0x2c9   : > { %2822 = vmatpush3.bf16.msra.mxu0 %v3084_v55  ;;  %2871 = vmatpush3.bf16.msra.mxu1 %v3084_v55 }
 0x2ca   : > { %2823 = vmatprep.subr.bf16.mxu0 %v3085_v56  ;;  %2864 = vmatprep.subr.bf16.mxu1 %v3085_v56 }
 0x2cd   : > { %2824 = vmatpush3.bf16.msra.mxu0 %v3085_v56  ;;  %2872 = vmatpush3.bf16.msra.mxu1 %v3085_v56 }
 0x2d0   : > { %2826 = vmatmul.mubr.bf16.vlgmr.msra.gmra.mrb[0].mxu0 %v1663_v1  ;;  %2842 = vmatmul.mubr.bf16.vlgmr.msra.gmra.mrb[0].mxu1 %v1671_v2 }
 0x2d1   : > { %2829 = vmatprep.mubr.bf16.mxu0 %v1664_v3  ;;  %2845 = vmatprep.mubr.bf16.mxu1 %v1672_v4 }
 0x2d8   : > { %2830 = vmatmul.mubr.bf16.gmra.mrb[4].mxu0 %v1665_v9  ;;  %2846 = vmatmul.mubr.bf16.gmra.mrb[4].mxu1 %v1673_v10  ;;  %v1932_v9 = vld [vmem:[%s3906_s17 + $0xb0] sm:$0xff] }
 0x2d9   : > { %2833 = vmatprep.mubr.bf16.mxu0 %v1666_v11  ;;  %2849 = vmatprep.mubr.bf16.mxu1 %v1674_v12 }
 0x2e0   : > { %2834 = vmatmul.mubr.bf16.gmra.mrb[8].mxu0 %v1667_v21  ;;  %2850 = vmatmul.mubr.bf16.gmra.mrb[8].mxu1 %v1675_v22  ;;  %v1914_v21 = vld [vmem:[%s3906_s17 + $0x20] sm:$0xff] }
 0x2e1   : > { %2837 = vmatprep.mubr.bf16.mxu0 %v1668_v23  ;;  %2853 = vmatprep.mubr.bf16.mxu1 %v1676_v24  ;;  %v1930_v23 = vld [vmem:[%s3906_s17 + $0xa0] sm:$0xff] }
 0x2e8   : > { %2838 = vmatmul.mubr.bf16.gmra.mrb[12].mxu0 %v1669_v29  ;;  %2854 = vmatmul.mubr.bf16.gmra.mrb[12].mxu1 %v1677_v30  ;;  %v1917_v29 = vld [vmem:[%s3906_s17 + $0x38] sm:$0xff] }
 0x3a3   : > { %v2827_v32 = vpop.f32.mrb[0].mxu0  ;;  %v2843_v34 = vpop.f32.mrb[0].mxu1 }
 0x3a4   : > { %v1792_v36 = vadd.f32 %v2827_v32, %v4904_v31  ;;  %v1856_v37 = vadd.f32 %v2843_v34, %v4904_v31  ;;  %v1783_v38 = vpop.f32.mrb[1].mxu0  ;;  %v1847_v40 = vpop.f32.mrb[1].mxu1  ;;  %v1933_v32 = vld [vmem:[%s3906_s17 + $0xb8] sm:$0xff] }
 0x3a5   : > { %v1784_v42 = vadd.f32 %v4904_v31, %v1783_v38  ;;  %v1848_v43 = vadd.f32 %v4904_v31, %v1847_v40  ;;  %v2828_v44 = vpop.f32.mrb[2].mxu0  ;;  %v2844_v27 = vpop.f32.mrb[2].mxu1  ;;  %v1915_v38 = vld [vmem:[%s3906_s17 + $0x28] sm:$0xff] }
 0x3a6   : > { %v1944_v52 = vadd.f32 %v1912_v33, %v1792_v36  ;;  %v1960_v53 = vadd.f32 %v1928_v35, %v1856_v37  ;;  %v1795_v54 = vadd.f32 %v2828_v44, %v4904_v31  ;;  %v1859_v55 = vadd.f32 %v2844_v27, %v4904_v31  ;;  %v1786_v56 = vpop.f32.mrb[3].mxu0  ;;  %v1850_v58 = vpop.f32.mrb[3].mxu1  ;;  %v1931_v40 = vld [vmem:[%s3906_s17 + $0xa8] sm:$0xff] }
 0x3a7   : > { %v1942_v60 = vadd.f32 %v1910_v39, %v1784_v42  ;;  %v1958_v61 = vadd.f32 %v1926_v41, %v1848_v43  ;;  %v1787_v62 = vadd.f32 %v4904_v31, %v1786_v56  ;;  %v1851_v63 = vadd.f32 %v4904_v31, %v1850_v58 }
 0x3a8   : > { %v1976_v0 = vmul.f32 0.1, %v1944_v52  ;;  %v1992_v1 = vmul.f32 0.1, %v1960_v53  ;;  %v1945_v2 = vadd.f32 %v1913_v50, %v1795_v54  ;;  %v1961_v3 = vadd.f32 %v1929_v51, %v1859_v55 }
 0x3a9   : > { %v1974_v4 = vmul.f32 0.1, %v1942_v60  ;;  %v1990_v5 = vmul.f32 0.1, %v1958_v61  ;;  %v1943_v6 = vadd.f32 %v1911_v57, %v1787_v62  ;;  %v1959_v7 = vadd.f32 %v1927_v59, %v1851_v63  ;;  %v1936_v62 = vld [vmem:[%s3906_s17 + $0xd0] sm:$0xff] }
 0x3aa   : > { %v2008_v45 = vmax.f32 %v1944_v52, %v1976_v0  ;;  %v2024_v8 = vmax.f32 %v1960_v53, %v1992_v1  ;;  %v1977_v46 = vmul.f32 0.1, %v1945_v2  ;;  %v1993_v47 = vmul.f32 0.1, %v1961_v3 }
 0x3ab   : > { %v2006_v10 = vmax.f32 %v1942_v60, %v1974_v4  ;;  %v2022_v11 = vmax.f32 %v1958_v61, %v1990_v5  ;;  %v1975_v12 = vmul.f32 0.1, %v1943_v6  ;;  %v1991_v13 = vmul.f32 0.1, %v1959_v7  ;;  %v2831_v14 = vpop.f32.mrb[4].mxu0  ;;  %v2847_v15 = vpop.f32.mrb[4].mxu1 }
 0x3ac   : > { %2040 = vst [vmem:[%s3913_s22 + $0x10] sm:$0xff] %v2008_v45  ;;  %2056 = vst [vmem:[%s3913_s22 + $0x90] sm:$0xff] %v2024_v8  ;;  %v2009_v16 = vmax.f32 %v1945_v2, %v1977_v46  ;;  %v2025_v17 = vmax.f32 %v1961_v3, %v1993_v47  ;;  %v1808_v18 = vadd.f32 %v2831_v14, %v4904_v31  ;;  %v1799_v20 = vpop.f32.mrb[5].mxu0  ;;  %v1863_v22 = vpop.f32.mrb[5].mxu1  ;;  %v1920_v61 = vld [vmem:[%s3906_s17 + $0x50] sm:$0xff]  ;;  %v1918_v46 = vld [vmem:[%s3906_s17 + $0x40] sm:$0xff] }
 0x3ad   : > { %v1872_v19 = vadd.f32 %v2847_v15, %v4904_v31  ;;  %2038 = vst [vmem:[%s3913_s22] sm:$0xff] %v2006_v10  ;;  %2054 = vst [vmem:[%s3913_s22 + $0x80] sm:$0xff] %v2022_v11  ;;  %v2007_v24 = vmax.f32 %v1943_v6, %v1975_v12  ;;  %v2023_v49 = vmax.f32 %v1959_v7, %v1991_v13  ;;  %v2832_v28 = vpop.f32.mrb[6].mxu0  ;;  %v2848_v30 = vpop.f32.mrb[6].mxu1  ;;  %v1921_v14 = vld [vmem:[%s3906_s17 + $0x58] sm:$0xff] }
 0x3ae   : > { %v1800_v25 = vadd.f32 %v4904_v31, %v1799_v20  ;;  %v1864_v26 = vadd.f32 %v4904_v31, %v1863_v22  ;;  %2041 = vst [vmem:[%s3913_s22 + $0x18] sm:$0xff] %v2009_v16  ;;  %2057 = vst [vmem:[%s3913_s22 + $0x98] sm:$0xff] %v2025_v17  ;;  %v1948_v33 = vadd.f32 %v1916_v48, %v1808_v18  ;;  %v1802_v37 = vpop.f32.mrb[7].mxu0  ;;  %v1866_v39 = vpop.f32.mrb[7].mxu1  ;;  %v1934_v48 = vld [vmem:[%s3906_s17 + $0xc0] sm:$0xff]  ;;  %v1937_v16 = vld [vmem:[%s3906_s17 + $0xd8] sm:$0xff] }
 0x3af   : > { %v1964_v34 = vadd.f32 %v1932_v9, %v1872_v19  ;;  %v1811_v35 = vadd.f32 %v2832_v28, %v4904_v31  ;;  %v1875_v36 = vadd.f32 %v2848_v30, %v4904_v31  ;;  %2039 = vst [vmem:[%s3913_s22 + $0x8] sm:$0xff] %v2007_v24  ;;  %2055 = vst [vmem:[%s3913_s22 + $0x88] sm:$0xff] %v2023_v49  ;;  %v1919_v22 = vld [vmem:[%s3906_s17 + $0x48] sm:$0xff] }
 0x3b0   : > { %v1946_v41 = vadd.f32 %v1914_v21, %v1800_v25  ;;  %v1962_v42 = vadd.f32 %v1930_v23, %v1864_v26  ;;  %v1803_v43 = vadd.f32 %v4904_v31, %v1802_v37  ;;  %v1867_v44 = vadd.f32 %v4904_v31, %v1866_v39  ;;  %v1935_v24 = vld [vmem:[%s3906_s17 + $0xc8] sm:$0xff] }
 0x3b1   : > { %v1980_v50 = vmul.f32 0.1, %v1948_v33  ;;  %v1996_v27 = vmul.f32 0.1, %v1964_v34  ;;  %v1949_v51 = vadd.f32 %v1917_v29, %v1811_v35  ;;  %v1965_v52 = vadd.f32 %v1933_v32, %v1875_v36 }
 0x3b2   : > { %v1978_v53 = vmul.f32 0.1, %v1946_v41  ;;  %v1994_v54 = vmul.f32 0.1, %v1962_v42  ;;  %v1947_v55 = vadd.f32 %v1915_v38, %v1803_v43  ;;  %v1963_v56 = vadd.f32 %v1931_v40, %v1867_v44  ;;  %v1940_v43 = vld [vmem:[%s3906_s17 + $0xf0] sm:$0xff] }
 0x3b3   : > { %v2012_v57 = vmax.f32 %v1948_v33, %v1980_v50  ;;  %v2028_v58 = vmax.f32 %v1964_v34, %v1996_v27  ;;  %v1981_v59 = vmul.f32 0.1, %v1949_v51  ;;  %v1997_v60 = vmul.f32 0.1, %v1965_v52  ;;  %v2835_v3 = vpop.f32.mrb[8].mxu0  ;;  %v2851_v4 = vpop.f32.mrb[8].mxu1 }
 0x3b4   : > { %v2010_v63 = vmax.f32 %v1946_v41, %v1978_v53  ;;  %v2026_v0 = vmax.f32 %v1962_v42, %v1994_v54  ;;  %v1979_v1 = vmul.f32 0.1, %v1947_v55  ;;  %v1995_v2 = vmul.f32 0.1, %v1963_v56  ;;  %v1815_v8 = vpop.f32.mrb[9].mxu0  ;;  %v1879_v47 = vpop.f32.mrb[9].mxu1 }
 0x3b5   : > { %2044 = vst [vmem:[%s3913_s22 + $0x30] sm:$0xff] %v2012_v57  ;;  %2060 = vst [vmem:[%s3913_s22 + $0xb0] sm:$0xff] %v2028_v58  ;;  %v2013_v5 = vmax.f32 %v1949_v51, %v1981_v59  ;;  %v2029_v6 = vmax.f32 %v1965_v52, %v1997_v60  ;;  %v1824_v7 = vadd.f32 %v2835_v3, %v4904_v31  ;;  %v2836_v13 = vpop.f32.mrb[10].mxu0  ;;  %v2852_v15 = vpop.f32.mrb[10].mxu1  ;;  %v1924_v42 = vld [vmem:[%s3906_s17 + $0x70] sm:$0xff]  ;;  %v1922_v59 = vld [vmem:[%s3906_s17 + $0x60] sm:$0xff] }
 0x3b6   : > { %v1888_v45 = vadd.f32 %v2851_v4, %v4904_v31  ;;  %2042 = vst [vmem:[%s3913_s22 + $0x20] sm:$0xff] %v2010_v63  ;;  %2058 = vst [vmem:[%s3913_s22 + $0xa0] sm:$0xff] %v2026_v0  ;;  %v2011_v9 = vmax.f32 %v1947_v55, %v1979_v1  ;;  %v2027_v10 = vmax.f32 %v1963_v56, %v1995_v2  ;;  %v1818_v21 = vpop.f32.mrb[11].mxu0  ;;  %v1882_v23 = vpop.f32.mrb[11].mxu1  ;;  %v1925_v3 = vld [vmem:[%s3906_s17 + $0x78] sm:$0xff] }
 0x3b7   : > { %v1816_v11 = vadd.f32 %v4904_v31, %v1815_v8  ;;  %v1880_v12 = vadd.f32 %v4904_v31, %v1879_v47  ;;  %2045 = vst [vmem:[%s3913_s22 + $0x38] sm:$0xff] %v2013_v5  ;;  %2061 = vst [vmem:[%s3913_s22 + $0xb8] sm:$0xff] %v2029_v6  ;;  %v1952_v17 = vadd.f32 %v1920_v61, %v1824_v7  ;;  %v1938_v61 = vld [vmem:[%s3906_s17 + $0xe0] sm:$0xff]  ;;  %v1941_v5 = vld [vmem:[%s3906_s17 + $0xf8] sm:$0xff] }
 0x3b8   : > { %v1968_v18 = vadd.f32 %v1936_v62, %v1888_v45  ;;  %v1827_v19 = vadd.f32 %v2836_v13, %v4904_v31  ;;  %v1891_v20 = vadd.f32 %v2852_v15, %v4904_v31  ;;  %2043 = vst [vmem:[%s3913_s22 + $0x28] sm:$0xff] %v2011_v9  ;;  %2059 = vst [vmem:[%s3913_s22 + $0xa8] sm:$0xff] %v2027_v10  ;;  %v1923_v47 = vld [vmem:[%s3906_s17 + $0x68] sm:$0xff] }
 0x3b9   : > { %v1950_v49 = vadd.f32 %v1918_v46, %v1816_v11  ;;  %v1966_v25 = vadd.f32 %v1934_v48, %v1880_v12  ;;  %v1819_v26 = vadd.f32 %v4904_v31, %v1818_v21  ;;  %v1883_v28 = vadd.f32 %v4904_v31, %v1882_v23  ;;  %v1939_v9 = vld [vmem:[%s3906_s17 + $0xe8] sm:$0xff] }
 0x3ba   : > { %v1984_v29 = vmul.f32 0.1, %v1952_v17  ;;  %v2000_v30 = vmul.f32 0.1, %v1968_v18  ;;  %v1953_v32 = vadd.f32 %v1921_v14, %v1827_v19  ;;  %v1969_v33 = vadd.f32 %v1937_v16, %v1891_v20 }
 0x3bb   : > { %v1982_v34 = vmul.f32 0.1, %v1950_v49  ;;  %v1998_v35 = vmul.f32 0.1, %v1966_v25  ;;  %v1951_v36 = vadd.f32 %v1919_v22, %v1819_v26  ;;  %v1967_v37 = vadd.f32 %v1935_v24, %v1883_v28  ;;  %v2839_v52 = vpop.f32.mrb[12].mxu0  ;;  %v2855_v53 = vpop.f32.mrb[12].mxu1 }
 0x3bc   : > { %v2016_v38 = vmax.f32 %v1952_v17, %v1984_v29  ;;  %v2032_v39 = vmax.f32 %v1968_v18, %v2000_v30  ;;  %v1985_v40 = vmul.f32 0.1, %v1953_v32  ;;  %v2001_v41 = vmul.f32 0.1, %v1969_v33  ;;  %v1831_v58 = vpop.f32.mrb[13].mxu0  ;;  %v1895_v60 = vpop.f32.mrb[13].mxu1 }
 0x3bd   : > { %v2014_v44 = vmax.f32 %v1950_v49, %v1982_v34  ;;  %v2030_v50 = vmax.f32 %v1966_v25, %v1998_v35  ;;  %v1983_v27 = vmul.f32 0.1, %v1951_v36  ;;  %v1999_v51 = vmul.f32 0.1, %v1967_v37  ;;  %v2840_v2 = vpop.f32.mrb[14].mxu0  ;;  %v2856_v4 = vpop.f32.mrb[14].mxu1 }
 0x3be   : > { %2048 = vst [vmem:[%s3913_s22 + $0x50] sm:$0xff] %v2016_v38  ;;  %2064 = vst [vmem:[%s3913_s22 + $0xd0] sm:$0xff] %v2032_v39  ;;  %v2017_v54 = vmax.f32 %v1953_v32, %v1985_v40  ;;  %v2033_v55 = vmax.f32 %v1969_v33, %v2001_v41  ;;  %v1840_v56 = vadd.f32 %v2839_v52, %v4904_v31  ;;  %v1834_v46 = vpop.f32.mrb[15].mxu0  ;;  %v1898_v48 = vpop.f32.mrb[15].mxu1 }
 0x3bf   : > { %v1904_v57 = vadd.f32 %v2855_v53, %v4904_v31  ;;  %2046 = vst [vmem:[%s3913_s22 + $0x40] sm:$0xff] %v2014_v44  ;;  %2062 = vst [vmem:[%s3913_s22 + $0xc0] sm:$0xff] %v2030_v50  ;;  %v2015_v62 = vmax.f32 %v1951_v36, %v1983_v27  ;;  %v2031_v63 = vmax.f32 %v1967_v37, %v1999_v51 }
 0x3c0   : > { %v1832_v0 = vadd.f32 %v4904_v31, %v1831_v58  ;;  %v1896_v1 = vadd.f32 %v4904_v31, %v1895_v60  ;;  %2049 = vst [vmem:[%s3913_s22 + $0x58] sm:$0xff] %v2017_v54  ;;  %2065 = vst [vmem:[%s3913_s22 + $0xd8] sm:$0xff] %v2033_v55  ;;  %v1956_v6 = vadd.f32 %v1924_v42, %v1840_v56 }
 0x3c1   : > { %v1972_v7 = vadd.f32 %v1940_v43, %v1904_v57  ;;  %v1843_v45 = vadd.f32 %v2840_v2, %v4904_v31  ;;  %v1907_v8 = vadd.f32 %v2856_v4, %v4904_v31  ;;  %2047 = vst [vmem:[%s3913_s22 + $0x48] sm:$0xff] %v2015_v62  ;;  %2063 = vst [vmem:[%s3913_s22 + $0xc8] sm:$0xff] %v2031_v63 }
 0x3c2   : > { %v1954_v10 = vadd.f32 %v1922_v59, %v1832_v0  ;;  %v1970_v11 = vadd.f32 %v1938_v61, %v1896_v1  ;;  %v1835_v12 = vadd.f32 %v4904_v31, %v1834_v46  ;;  %v1899_v13 = vadd.f32 %v4904_v31, %v1898_v48 }
 0x3c3   : > { %v1988_v14 = vmul.f32 0.1, %v1956_v6  ;;  %v2004_v15 = vmul.f32 0.1, %v1972_v7  ;;  %v1957_v16 = vadd.f32 %v1925_v3, %v1843_v45  ;;  %v1973_v17 = vadd.f32 %v1941_v5, %v1907_v8 }
 0x3c4   : > { %v1986_v18 = vmul.f32 0.1, %v1954_v10  ;;  %v2002_v19 = vmul.f32 0.1, %v1970_v11  ;;  %v1955_v20 = vadd.f32 %v1923_v47, %v1835_v12  ;;  %v1971_v21 = vadd.f32 %v1939_v9, %v1899_v13 }
 0x3c5   : > { %v2020_v22 = vmax.f32 %v1956_v6, %v1988_v14  ;;  %v2036_v23 = vmax.f32 %v1972_v7, %v2004_v15  ;;  %v1989_v24 = vmul.f32 0.1, %v1957_v16  ;;  %v2005_v49 = vmul.f32 0.1, %v1973_v17 }
 0x3c6   : > { %v2018_v31 = vmax.f32 %v1954_v10, %v1986_v18  ;;  %v2034_v25 = vmax.f32 %v1970_v11, %v2002_v19  ;;  %v1987_v26 = vmul.f32 0.1, %v1955_v20  ;;  %v2003_v28 = vmul.f32 0.1, %v1971_v21 }
 0x3c7   : > { %2052 = vst [vmem:[%s3913_s22 + $0x70] sm:$0xff] %v2020_v22  ;;  %2068 = vst [vmem:[%s3913_s22 + $0xf0] sm:$0xff] %v2036_v23  ;;  %v2021_v29 = vmax.f32 %v1957_v16, %v1989_v24  ;;  %v2037_v30 = vmax.f32 %v1973_v17, %v2005_v49 }
 0x3c8   : > { %2050 = vst [vmem:[%s3913_s22 + $0x60] sm:$0xff] %v2018_v31  ;;  %2066 = vst [vmem:[%s3913_s22 + $0xe0] sm:$0xff] %v2034_v25  ;;  %v2019_v32 = vmax.f32 %v1955_v20, %v1987_v26  ;;  %v2035_v33 = vmax.f32 %v1971_v21, %v2003_v28 }
 0x3c9   : > { %2053 = vst [vmem:[%s3913_s22 + $0x78] sm:$0xff] %v2021_v29  ;;  %2069 = vst [vmem:[%s3913_s22 + $0xf8] sm:$0xff] %v2037_v30 }
 0x3ca   : > { %2051 = vst [vmem:[%s3913_s22 + $0x68] sm:$0xff] %v2019_v32  ;;  %2067 = vst [vmem:[%s3913_s22 + $0xe8] sm:$0xff] %v2035_v33 }
 0x3cb PF: > { %s5412_s7 = sld [smem:[#allocation33_spill]]  ;;  %s5413_s2 = sld [smem:[#allocation44_spill]] }
 0x3cc   : > { %s2084_s30 = sshll.u32 %s3913_s22, 4  ;;  %s2071_s10 = scalar_lea.sflag [#allocation8], %s3902_s24  ;;  %s5009_s30 = int_to_ptr.vmem [resolvable:$true] %s2084_s30 }
 0x3cd   : > { %s3226_s12 = scalar_lea.vmem %s5009_s30, 4096  ;;  %p5414_p9 = scmp.ne.s32.totalorder %s5175_s23, 0 }
 0x3ce   : > { %p3227_p3 = scmp.ne.s32.totalorder %s5009_s30, %s3226_s12  ;;  %s3400_s21 = smov [#allocation14]  }
 0x3cf   : > { %s3230_s4 = sshll.u32 %s3400_s21, 4  ;;  %s3231_s4 = int_to_ptr.vmem [resolvable:$false] %s3230_s4 }
 0x3d0   : > { %p3228_p4 = pnand %p3227_p3, %p5414_p9  ;;  %s3232_s29 = scalar_lea.vmem %s3231_s4, 8192 }
 0x3d1   : > { %s2560_s9 = sshll.u32 %s5412_s7, 12  ;;  %p3233_p13 = scmp.lt.s32.totalorder %s5009_s30, %s3231_s4 }
 0x3d2   : > { %s5006_s20 = scalar_lea.hbm %s5413_s2, %s2560_s9  ;;  %p3229_p5 = pneg %p3228_p4 }
 0x3d3   : > { %p3234_p8 = scmp.lt.s32.totalorder %s3232_s29, %s3226_s12 }
 0x3d5   : > { %p3235_p10 = por %p3234_p8, %p3233_p13 }
 0x3d7   : > { %p3236_p7 = pnand %p3235_p10, %p3229_p5 }
 0x3d9   : > { %3239 = shalt.err (!%p3236_p7)
}
 0x3da   : > { %s3240_s22 = scalar_lea.hbm %s5006_s20, 4096  ;;  %s3244_s28 = scalar_lea.hbm %s5413_s2, 8192 }
 0x3db   : > { %p3241_p6 = scmp.ne.s32.totalorder %s5006_s20, %s3240_s22  ;;  %p3245_p1 = scmp.lt.u32.totalorder %s5006_s20, %s5413_s2 }
 0x3dc   : > { %p3246_p2 = scmp.lt.u32.totalorder %s3244_s28, %s3240_s22  ;;  %p3248_p3 = scmp.lt.u32.totalorder %s3240_s22, %s5006_s20 }
 0x3dd   : > { %p3242_p12 = pnand %p3241_p6, %p5414_p9 }
 0x3de   : > { %p3247_p0 = por %p3246_p2, %p3245_p1 }
 0x3df   : > { %p3243_p11 = pneg %p3242_p12 }
 0x3e0   : > { %p3249_p4 = por %p3248_p3, %p3247_p0 }
 0x3e2   : > { %p3250_p5 = pnand %p3249_p4, %p3243_p11 }
 0x3e4   : > { %3253 = shalt.err (!%p3250_p5)
}
 0x3e5   : > { %s3401_s5 = smov 128   ;;  %s3402_s17 = smov 8  }
 0x3e6   : > { %2891 = dma.vmem_to_hbm [thread:$0]  (%p5414_p9), %s5009_s30, 4096, %s5006_s20, %s2071_s10, %s3401_s5, %s3401_s5, %s3402_s17  }
 0x3e7 PF: > { %p2922_p13 = scmp.ge.s32.totalorder %s3386_s27, 2  ;;  %s2099_s12 = sand.u32 1, %s3334_s0  }
 0x3e8   : > { %p5415_p8 = scmp.ne.s32.totalorder %s5176_s3, 0  ;;  %s2100_s21 = scalar_lea.sflag [#allocation8], %s2099_s12 }
 0x3ea   : > { %p2916_p10 = pnand %p2922_p13, %p5415_p8 }
 0x3ec   : > { %3329 = dma.done.wait (!%p2916_p10), %s2100_s21, 4096  }
 0x3ed   : > { %3331 = vsyncadd (!%p2916_p10), %s2100_s21, 4294963200  ;;  %s37_s27 = sadd.s32 1, %s3386_s27   ;;  %s5417_s17 = sld [smem:[#allocation29_spill]] }
 0x3ee   : > { %p5040_p7 = scmp.ge.s32.totalorder %s37_s27, 6   ;;  %s5418_s20 = sld [smem:[#allocation30_spill]] }
 0x3ef   : > { %s5419_s21 = sld [smem:[#allocation31_spill]]  ;;  %s5420_s22 = sld [smem:[#allocation37_spill]] }
 0x3f0   : > { %s5421_s0 = smov %s3338_s1  ;;  %s5422_s1 = smov %s3342_s16 }
 0x3f1   : > { %s5423_s16 = smov %s3779_s18  ;;  %s5424_s18 = smov %s3354_s19 }
 0x3f2   : > { %s5425_s19 = smov %s3742_s15  ;;  %s5426_s23 = smov %s3378_s25 }
 0x3f3   : > { %s5427_s24 = smov %s3382_s26  ;;  %s5428_s25 = smov %s5431_s13 }
 0x3f4   : > { %s5429_s26 = smov %s5435_s14  ;;  %36 = sbr.rel (!%p5040_p7) target bundleno = 37 (0x25), region = 127 }
 0x3fb   :  { %2105 = vsyncpa [#allocation7], 1 }
 0x3fc   :  { %2107 = vsyncpa [#allocation7 + $0x1], 1 }
 0x3fd   :  { %2108 = vsyncpa [#allocation10], 1 }
 0x3fe   :  { %2110 = vsyncpa [#allocation10 + $0x1], 1 }
 0x3ff   :  { %2111 = vsyncpa [#allocation13], 1 }
 0x400   :  { %2113 = vsyncpa [#allocation13 + $0x1], 1 }
 0x401   :  { %2114 = vsyncpa [#allocation8], 1 }
 0x402   :  { %2116 = vsyncpa [#allocation8 + $0x1], 1 }

</bundles_post_ra>
